<compile_context>
chip_gen: v7x
topology: tpu7x:2x2x1
jax: 0.10.0
libtpu: 0.0.40
codegen_flags: <defaults>
</compile_context>

<pallas_src>
import functools
import math

import jax
import jax.numpy as jnp
from jax.experimental import pallas as pl
from jax.experimental.pallas import tpu as pltpu

# ---- small stand-in config for bert-base-chinese (768 / 12 heads / 12 layers) ----
VOCAB = 128
MAX_POS = 16
TYPE_VOCAB = 2
HIDDEN = 32
N_HEADS = 2
HEAD_DIM = HIDDEN // N_HEADS
FFN = 64
N_LAYERS = 2
N_CLASSES = 2
LN_EPS = 1e-12

# rows of the per-layer (8, HIDDEN) bias/LN slab
_BO, _LN1G, _LN1B, _B2, _LN2G, _LN2B = 0, 1, 2, 3, 4, 5


# ----------------------------- in-kernel helpers ------------------------------
def _layernorm(x, g, b):
    mean = jnp.mean(x, axis=-1, keepdims=True)
    xc = x - mean
    var = jnp.mean(xc * xc, axis=-1, keepdims=True)
    return xc * jax.lax.rsqrt(var + LN_EPS) * g + b


def _gelu(x):
    # TODO(synk): HF BertIntermediate uses exact erf-GELU; tanh approximation here.
    return 0.5 * x * (1.0 + jnp.tanh(0.7978845608028654 * (x + 0.044715 * x * x * x)))


# ------------------------------ fused BERT kernel ------------------------------
def _bert_fused_kernel(
    emb_ref, mask_ref, emb_ln_g_ref, emb_ln_b_ref,
    wqkv_ref, bqkv_ref, wo_ref, vec_ref,
    w1_ref, b1_ref, w2_ref,
    fc_w_ref, fc_b_ref,
    out_ref,
    h_ref,
    *, B, S,
):
    layer = pl.program_id(0)
    scale = 1.0 / math.sqrt(HEAD_DIM)

    # ---- layer 0: embedding layernorm initializes the resident hidden state ----
    # (emb is streamed with a constant index_map, so it is only read here.)
    @pl.when(layer == 0)
    def _():
        h_ref[...] = _layernorm(emb_ref[...], emb_ln_g_ref[...], emb_ln_b_ref[...])

    h = h_ref[...]                                   # (B*S, H) f32
    h_bf = h.astype(jnp.bfloat16)

    # ---- per-head QKV projections (head-major weights, no lane slicing) ----
    q_heads, k_heads, v_heads = [], [], []
    for hh in range(N_HEADS):
        for dst, c in ((q_heads, 0), (k_heads, 1), (v_heads, 2)):
            w = wqkv_ref[0, 3 * hh + c]              # (H, Dh) bf16, leading-axis view
            bvec = bqkv_ref[0, 3 * hh + c]           # (1, Dh) f32
            dst.append(jnp.dot(h_bf, w, preferred_element_type=jnp.float32) + bvec)

    # ---- self attention; per-batch/head statically unrolled, all in registers ----
    attn_rows = []
    for b in range(B):                               # static unroll
        r0 = b * S
        mb = mask_ref[b:b + 1, :]                    # (1, S) additive bias
        acc = None
        for hh in range(N_HEADS):                    # static unroll
            q_bh = q_heads[hh][r0:r0 + S, :]         # (S, Dh) sublane-aligned slice
            k_bh = k_heads[hh][r0:r0 + S, :]
            v_bh = v_heads[hh][r0:r0 + S, :]
            # Q @ K^T with the transpose folded into the MXU operand feed.
            s = jax.lax.dot_general(
                q_bh, k_bh, (((1,), (1,)), ((), ())),
                preferred_element_type=jnp.float32) * scale
            s = s + mb
            m = jnp.max(s, axis=-1, keepdims=True)
            p = jnp.exp(s - m)
            p = p / jnp.sum(p, axis=-1, keepdims=True)
            ctx = jnp.dot(p, v_bh, preferred_element_type=jnp.float32)     # (S, Dh)
            # sum_h ctx_h @ wo[h]  ==  concat_h(ctx_h) @ Wo   (no concat needed)
            part = jnp.dot(ctx.astype(jnp.bfloat16), wo_ref[0, hh],
                           preferred_element_type=jnp.float32)             # (S, H)
            acc = part if acc is None else acc + part
        attn_rows.append(acc)
    attn = attn_rows[0] if B == 1 else jnp.concatenate(attn_rows, axis=0)  # (B*S, H)

    # ---- per-layer bias / LN slab (one DMA per layer instead of six) ----
    slab = vec_ref[0]                                # (8, H) f32
    bo, ln1_g, ln1_b = slab[_BO:_BO + 1, :], slab[_LN1G:_LN1G + 1, :], slab[_LN1B:_LN1B + 1, :]
    b2, ln2_g, ln2_b = slab[_B2:_B2 + 1, :], slab[_LN2G:_LN2G + 1, :], slab[_LN2B:_LN2B + 1, :]

    h1 = _layernorm(attn + bo + h, ln1_g, ln1_b)

    # ---- feed-forward (bf16 weights, f32 accumulate) ----
    ff = _gelu(jnp.dot(h1.astype(jnp.bfloat16), w1_ref[0],
                       preferred_element_type=jnp.float32) + b1_ref[0])
    ff = jnp.dot(ff.astype(jnp.bfloat16), w2_ref[0],
                 preferred_element_type=jnp.float32) + b2
    h_new = _layernorm(ff + h1, ln2_g, ln2_b)
    h_ref[...] = h_new

    # ---- last layer: fused classifier head (static CLS gather -> fc -> softmax).
    # Output block is only written here; Pallas writes the resident output block
    # back to HBM after the final grid step, so this is the only HBM output.
    @pl.when(layer == pl.num_programs(0) - 1)
    def _():
        if B > 1:
            cls_h = jnp.concatenate([h_new[b * S:b * S + 1, :] for b in range(B)], axis=0)
        else:
            cls_h = h_new[0:1, :]
        logits = jnp.dot(cls_h, fc_w_ref[...],
                         preferred_element_type=jnp.float32) + fc_b_ref[...]
        m = jnp.max(logits, axis=-1, keepdims=True)
        e = jnp.exp(logits - m)
        out_ref[...] = e / jnp.sum(e, axis=-1, keepdims=True)              # softmax(dim=1)


# ----------------------------- parameters ------------------------------------
def init_params(key):
    ks = jax.random.split(key, 8)

    def norm(k, shape, scale=0.02):
        return scale * jax.random.normal(k, shape, dtype=jnp.float32)

    L, H, F, NH, Dh = N_LAYERS, HIDDEN, FFN, N_HEADS, HEAD_DIM

    # per-layer bias/LN slab rows: bo, ln1_g, ln1_b, b2, ln2_g, ln2_b, pad, pad
    vec = jnp.concatenate([
        jnp.zeros((L, 1, H), jnp.float32),   # bo
        jnp.ones((L, 1, H), jnp.float32),    # ln1_g
        jnp.zeros((L, 1, H), jnp.float32),   # ln1_b
        jnp.zeros((L, 1, H), jnp.float32),   # b2
        jnp.ones((L, 1, H), jnp.float32),    # ln2_g
        jnp.zeros((L, 1, H), jnp.float32),   # ln2_b
        jnp.zeros((L, 2, H), jnp.float32),   # pad
    ], axis=1)                               # (L, 8, H)

    return {
        "word_emb": norm(ks[0], (VOCAB, H)),
        "pos_emb": norm(ks[1], (MAX_POS, H)),
        "type_emb": norm(ks[2], (TYPE_VOCAB, H)),
        "emb_ln_g": jnp.ones((1, H), jnp.float32),
        "emb_ln_b": jnp.zeros((1, H), jnp.float32),
        # head-major fused QKV: index 3*head + {0:Q, 1:K, 2:V}
        "wqkv": norm(ks[3], (L, 3 * NH, H, Dh)).astype(jnp.bfloat16),
        "bqkv": jnp.zeros((L, 3 * NH, 1, Dh), jnp.float32),
        # head-major output projection: wo[l, h] is (Dh, H)
        "wo": norm(ks[4], (L, NH, Dh, H)).astype(jnp.bfloat16),
        "vec": vec,
        "w1": norm(ks[5], (L, H, F)).astype(jnp.bfloat16),
        "b1": jnp.zeros((L, 1, F), jnp.float32),
        "w2": norm(ks[6], (L, F, H)).astype(jnp.bfloat16),
        # torch.nn.Linear(768, 2) stores weight as (out, in); we store (in, out).
        "fc_w": norm(ks[7], (H, N_CLASSES)),
        "fc_b": jnp.zeros((1, N_CLASSES), jnp.float32),
    }


# ----------------------------- forward pass -----------------------------------
def model_forward(params, input_ids, attention_mask, token_type_ids):
    B, S = input_ids.shape
    BS = B * S
    L = params["wqkv"].shape[0]

    # Embedding-table gathers are glue in plain JAX; everything downstream runs
    # inside ONE pallas_call.
    pos_ids = jnp.arange(S)[None, :]
    emb = (params["word_emb"][input_ids]
           + params["pos_emb"][pos_ids]
           + params["type_emb"][token_type_ids]).reshape(BS, HIDDEN)

    mask_bias = (1.0 - attention_mask.astype(jnp.float32)) * -1e9          # (B, S)

    def full(shape):
        n = len(shape)
        return pl.BlockSpec(shape, lambda l, _n=n: (0,) * _n)

    def per_layer(shape):
        n = len(shape)
        return pl.BlockSpec((1,) + shape, lambda l, _n=n: (l,) + (0,) * _n)

    grid_spec = pltpu.PrefetchScalarGridSpec(
        num_scalar_prefetch=0,
        grid=(L,),
        in_specs=[
            full((BS, HIDDEN)),                              # emb (word+pos+type sums)
            full((B, S)),                                    # additive attention-mask bias
            full((1, HIDDEN)),                               # emb_ln_g
            full((1, HIDDEN)),                               # emb_ln_b
            per_layer((3 * N_HEADS, HIDDEN, HEAD_DIM)),      # wqkv (head-major, bf16)
            per_layer((3 * N_HEADS, 1, HEAD_DIM)),           # bqkv
            per_layer((N_HEADS, HEAD_DIM, HIDDEN)),          # wo (head-major, bf16)
            per_layer((8, HIDDEN)),                          # bias/LN slab
            per_layer((HIDDEN, FFN)),                        # w1 (bf16)
            per_layer((1, FFN)),                             # b1
            per_layer((FFN, HIDDEN)),                        # w2 (bf16)
            full((HIDDEN, N_CLASSES)),                       # fc_w
            full((1, N_CLASSES)),                            # fc_b
        ],
        out_specs=pl.BlockSpec((B, N_CLASSES), lambda l: (0, 0)),
        scratch_shapes=[
            pltpu.VMEM((BS, HIDDEN), jnp.float32),           # resident hidden state h
        ],
    )

    kernel = functools.partial(_bert_fused_kernel, B=B, S=S)
    probs = pl.pallas_call(
        kernel,
        grid_spec=grid_spec,
        out_shape=jax.ShapeDtypeStruct((B, N_CLASSES), jnp.float32),
        compiler_params=pltpu.CompilerParams(
            dimension_semantics=("arbitrary",),              # layers are sequential (h carried)
            vmem_limit_bytes=48 * 1024 * 1024,               # within physical VMEM on v5e/v6e/v7x
        ),
    )(emb, mask_bias,
      params["emb_ln_g"], params["emb_ln_b"],
      params["wqkv"], params["bqkv"], params["wo"], params["vec"],
      params["w1"], params["b1"], params["w2"],
      params["fc_w"], params["fc_b"])
    return probs


# ---------------------------------- main --------------------------------------
if __name__ == "__main__":
    key = jax.random.PRNGKey(0)
    pkey, ikey = jax.random.split(key)

    params = init_params(pkey)

    B, S = 2, 8
    input_ids = jax.random.randint(ikey, (B, S), 0, VOCAB, dtype=jnp.int32)
    attention_mask = jnp.ones((B, S), dtype=jnp.int32)
    attention_mask = attention_mask.at[1, -2:].set(0)        # some padding in batch 1
    token_type_ids = jnp.zeros((B, S), dtype=jnp.int32)

    fwd = jax.jit(model_forward)
    out = fwd(params, input_ids, attention_mask, token_type_ids)
    out = jax.block_until_ready(out)

    assert out.shape == (B, N_CLASSES)
    # rows of a softmax must sum to 1
    assert bool(jnp.allclose(jnp.sum(out, axis=1), 1.0, atol=1e-5))
    print("KERNEL_OK")
</pallas_src>

<mosaic_0001>
module attributes {stable_mosaic.version = 11 : i64} {
  func.func @_bert_fused_kernel(%arg0: i32, %arg1: memref<16x32xf32, #tpu.memory_space<vmem>>, %arg2: memref<2x8xf32, #tpu.memory_space<vmem>>, %arg3: memref<1x32xf32, #tpu.memory_space<vmem>>, %arg4: memref<1x32xf32, #tpu.memory_space<vmem>>, %arg5: memref<1x6x32x16xbf16, #tpu.memory_space<vmem>>, %arg6: memref<1x6x1x16xf32, #tpu.memory_space<vmem>>, %arg7: memref<1x2x16x32xbf16, #tpu.memory_space<vmem>>, %arg8: memref<1x8x32xf32, #tpu.memory_space<vmem>>, %arg9: memref<1x32x64xbf16, #tpu.memory_space<vmem>>, %arg10: memref<1x1x64xf32, #tpu.memory_space<vmem>>, %arg11: memref<1x64x32xbf16, #tpu.memory_space<vmem>>, %arg12: memref<32x2xf32, #tpu.memory_space<vmem>>, %arg13: memref<1x2xf32, #tpu.memory_space<vmem>>, %arg14: memref<2x2xf32, #tpu.memory_space<vmem>>, %arg15: memref<16x32xf32, #tpu.memory_space<vmem>>) attributes {dimension_semantics = [#tpu.dimension_semantics<arbitrary>], iteration_bounds = array<i64: 2>, scalar_prefetch = 0 : i64, scratch_operands = 1 : i64, tpu.core_type = #tpu.core_type<tc>, window_params = [{pipeline_mode = #tpu.pipeline_mode<synchronous>, transform_indices = @transform_0, window_bounds = array<i64: 16, 32>}, {pipeline_mode = #tpu.pipeline_mode<synchronous>, transform_indices = @transform_1, window_bounds = array<i64: 2, 8>}, {pipeline_mode = #tpu.pipeline_mode<synchronous>, transform_indices = @transform_2, window_bounds = array<i64: 1, 32>}, {pipeline_mode = #tpu.pipeline_mode<synchronous>, transform_indices = @transform_3, window_bounds = array<i64: 1, 32>}, {transform_indices = @transform_4, window_bounds = array<i64: 1, 6, 32, 16>}, {transform_indices = @transform_5, window_bounds = array<i64: 1, 6, 1, 16>}, {transform_indices = @transform_6, window_bounds = array<i64: 1, 2, 16, 32>}, {transform_indices = @transform_7, window_bounds = array<i64: 1, 8, 32>}, {transform_indices = @transform_8, window_bounds = array<i64: 1, 32, 64>}, {transform_indices = @transform_9, window_bounds = array<i64: 1, 1, 64>}, {transform_indices = @transform_10, window_bounds = array<i64: 1, 64, 32>}, {pipeline_mode = #tpu.pipeline_mode<synchronous>, transform_indices = @transform_11, window_bounds = array<i64: 32, 2>}, {pipeline_mode = #tpu.pipeline_mode<synchronous>, transform_indices = @transform_12, window_bounds = array<i64: 1, 2>}, {pipeline_mode = #tpu.pipeline_mode<synchronous>, transform_indices = @transform_13, window_bounds = array<i64: 2, 2>}]} {
    %c0_i32 = arith.constant 0 : i32
    %0 = arith.cmpi eq, %arg0, %c0_i32 : i32
    %1 = arith.extui %0 : i1 to i32
    %c0_i32_0 = arith.constant 0 : i32
    %2 = arith.cmpi ne, %1, %c0_i32_0 : i32
    scf.if %2 {
      %c0_125 = arith.constant 0 : index
      %c0_126 = arith.constant 0 : index
      %223 = vector.load %arg1[%c0_125, %c0_126] : memref<16x32xf32, #tpu.memory_space<vmem>>, vector<16x32xf32>
      %c0_127 = arith.constant 0 : index
      %c0_128 = arith.constant 0 : index
      %224 = vector.load %arg3[%c0_127, %c0_128] : memref<1x32xf32, #tpu.memory_space<vmem>>, vector<1x32xf32>
      %c0_129 = arith.constant 0 : index
      %c0_130 = arith.constant 0 : index
      %225 = vector.load %arg4[%c0_129, %c0_130] : memref<1x32xf32, #tpu.memory_space<vmem>>, vector<1x32xf32>
      %cst_131 = arith.constant dense<0.000000e+00> : vector<16xf32>
      %226 = vector.multi_reduction <add>, %223, %cst_131 [1] : vector<16x32xf32> to vector<16xf32>
      %227 = vector.shape_cast %226 : vector<16xf32> to vector<16x1xf32>
      %cst_132 = arith.constant 3.200000e+01 : f32
      %228 = vector.broadcast %cst_132 : f32 to vector<16x1xf32>
      %229 = arith.divf %227, %228 : vector<16x1xf32>
      %230 = vector.broadcast %229 : vector<16x1xf32> to vector<16x32xf32>
      %231 = arith.subf %223, %230 : vector<16x32xf32>
      %232 = arith.mulf %231, %231 : vector<16x32xf32>
      %cst_133 = arith.constant dense<0.000000e+00> : vector<16xf32>
      %233 = vector.multi_reduction <add>, %232, %cst_133 [1] : vector<16x32xf32> to vector<16xf32>
      %234 = vector.shape_cast %233 : vector<16xf32> to vector<16x1xf32>
      %cst_134 = arith.constant 3.200000e+01 : f32
      %235 = vector.broadcast %cst_134 : f32 to vector<16x1xf32>
      %236 = arith.divf %234, %235 : vector<16x1xf32>
      %cst_135 = arith.constant 9.99999996E-13 : f32
      %237 = vector.broadcast %cst_135 : f32 to vector<16x1xf32>
      %238 = arith.addf %236, %237 : vector<16x1xf32>
      %239 = math.rsqrt %238 : vector<16x1xf32>
      %240 = vector.broadcast %239 : vector<16x1xf32> to vector<16x32xf32>
      %241 = arith.mulf %231, %240 : vector<16x32xf32>
      %242 = vector.broadcast %224 : vector<1x32xf32> to vector<16x32xf32>
      %243 = arith.mulf %241, %242 : vector<16x32xf32>
      %244 = vector.broadcast %225 : vector<1x32xf32> to vector<16x32xf32>
      %245 = arith.addf %243, %244 : vector<16x32xf32>
      %c0_136 = arith.constant 0 : index
      %c0_137 = arith.constant 0 : index
      %246 = vector.load %arg15[%c0_136, %c0_137] : memref<16x32xf32, #tpu.memory_space<vmem>>, vector<16x32xf32>
      tpu.vector_store %arg15[%c0_136, %c0_137], %245 {strides = array<i32>} : memref<16x32xf32, #tpu.memory_space<vmem>>, vector<16x32xf32>,
    } else {
    }
    %c0 = arith.constant 0 : index
    %c0_1 = arith.constant 0 : index
    %3 = vector.load %arg15[%c0, %c0_1] : memref<16x32xf32, #tpu.memory_space<vmem>>, vector<16x32xf32>
    %4 = arith.truncf %3 : vector<16x32xf32> to vector<16x32xbf16>
    %c0_2 = arith.constant 0 : index
    %c0_3 = arith.constant 0 : index
    %c0_4 = arith.constant 0 : index
    %c0_5 = arith.constant 0 : index
    %5 = vector.load %arg5[%c0_2, %c0_3, %c0_4, %c0_5] : memref<1x6x32x16xbf16, #tpu.memory_space<vmem>>, vector<1x1x32x16xbf16>
    %6 = vector.shape_cast %5 : vector<1x1x32x16xbf16> to vector<32x16xbf16>
    %c0_6 = arith.constant 0 : index
    %c0_7 = arith.constant 0 : index
    %c0_8 = arith.constant 0 : index
    %c0_9 = arith.constant 0 : index
    %7 = vector.load %arg6[%c0_6, %c0_7, %c0_8, %c0_9] : memref<1x6x1x16xf32, #tpu.memory_space<vmem>>, vector<1x1x1x16xf32>
    %8 = vector.shape_cast %7 : vector<1x1x1x16xf32> to vector<1x16xf32>
    %cst = arith.constant dense<0.000000e+00> : vector<16x16xf32>
    %9 = tpu.matmul %4, %6, %cst {dimension_numbers = #tpu.dot_dimension_numbers<[1], [0], [0], [1], [0, 0, 1, 1], [], []>} : vector<16x32xbf16>, vector<32x16xbf16>, vector<16x16xf32> -> vector<16x16xf32>
    %10 = vector.broadcast %8 : vector<1x16xf32> to vector<16x16xf32>
    %11 = arith.addf %9, %10 : vector<16x16xf32>
    %c0_10 = arith.constant 0 : index
    %c1 = arith.constant 1 : index
    %c0_11 = arith.constant 0 : index
    %c0_12 = arith.constant 0 : index
    %12 = vector.load %arg5[%c0_10, %c1, %c0_11, %c0_12] : memref<1x6x32x16xbf16, #tpu.memory_space<vmem>>, vector<1x1x32x16xbf16>
    %13 = vector.shape_cast %12 : vector<1x1x32x16xbf16> to vector<32x16xbf16>
    %c0_13 = arith.constant 0 : index
    %c1_14 = arith.constant 1 : index
    %c0_15 = arith.constant 0 : index
    %c0_16 = arith.constant 0 : index
    %14 = vector.load %arg6[%c0_13, %c1_14, %c0_15, %c0_16] : memref<1x6x1x16xf32, #tpu.memory_space<vmem>>, vector<1x1x1x16xf32>
    %15 = vector.shape_cast %14 : vector<1x1x1x16xf32> to vector<1x16xf32>
    %cst_17 = arith.constant dense<0.000000e+00> : vector<16x16xf32>
    %16 = tpu.matmul %4, %13, %cst_17 {dimension_numbers = #tpu.dot_dimension_numbers<[1], [0], [0], [1], [0, 0, 1, 1], [], []>} : vector<16x32xbf16>, vector<32x16xbf16>, vector<16x16xf32> -> vector<16x16xf32>
    %17 = vector.broadcast %15 : vector<1x16xf32> to vector<16x16xf32>
    %18 = arith.addf %16, %17 : vector<16x16xf32>
    %c0_18 = arith.constant 0 : index
    %c2 = arith.constant 2 : index
    %c0_19 = arith.constant 0 : index
    %c0_20 = arith.constant 0 : index
    %19 = vector.load %arg5[%c0_18, %c2, %c0_19, %c0_20] : memref<1x6x32x16xbf16, #tpu.memory_space<vmem>>, vector<1x1x32x16xbf16>
    %20 = vector.shape_cast %19 : vector<1x1x32x16xbf16> to vector<32x16xbf16>
    %c0_21 = arith.constant 0 : index
    %c2_22 = arith.constant 2 : index
    %c0_23 = arith.constant 0 : index
    %c0_24 = arith.constant 0 : index
    %21 = vector.load %arg6[%c0_21, %c2_22, %c0_23, %c0_24] : memref<1x6x1x16xf32, #tpu.memory_space<vmem>>, vector<1x1x1x16xf32>
    %22 = vector.shape_cast %21 : vector<1x1x1x16xf32> to vector<1x16xf32>
    %cst_25 = arith.constant dense<0.000000e+00> : vector<16x16xf32>
    %23 = tpu.matmul %4, %20, %cst_25 {dimension_numbers = #tpu.dot_dimension_numbers<[1], [0], [0], [1], [0, 0, 1, 1], [], []>} : vector<16x32xbf16>, vector<32x16xbf16>, vector<16x16xf32> -> vector<16x16xf32>
    %24 = vector.broadcast %22 : vector<1x16xf32> to vector<16x16xf32>
    %25 = arith.addf %23, %24 : vector<16x16xf32>
    %c0_26 = arith.constant 0 : index
    %c3 = arith.constant 3 : index
    %c0_27 = arith.constant 0 : index
    %c0_28 = arith.constant 0 : index
    %26 = vector.load %arg5[%c0_26, %c3, %c0_27, %c0_28] : memref<1x6x32x16xbf16, #tpu.memory_space<vmem>>, vector<1x1x32x16xbf16>
    %27 = vector.shape_cast %26 : vector<1x1x32x16xbf16> to vector<32x16xbf16>
    %c0_29 = arith.constant 0 : index
    %c3_30 = arith.constant 3 : index
    %c0_31 = arith.constant 0 : index
    %c0_32 = arith.constant 0 : index
    %28 = vector.load %arg6[%c0_29, %c3_30, %c0_31, %c0_32] : memref<1x6x1x16xf32, #tpu.memory_space<vmem>>, vector<1x1x1x16xf32>
    %29 = vector.shape_cast %28 : vector<1x1x1x16xf32> to vector<1x16xf32>
    %cst_33 = arith.constant dense<0.000000e+00> : vector<16x16xf32>
    %30 = tpu.matmul %4, %27, %cst_33 {dimension_numbers = #tpu.dot_dimension_numbers<[1], [0], [0], [1], [0, 0, 1, 1], [], []>} : vector<16x32xbf16>, vector<32x16xbf16>, vector<16x16xf32> -> vector<16x16xf32>
    %31 = vector.broadcast %29 : vector<1x16xf32> to vector<16x16xf32>
    %32 = arith.addf %30, %31 : vector<16x16xf32>
    %c0_34 = arith.constant 0 : index
    %c4 = arith.constant 4 : index
    %c0_35 = arith.constant 0 : index
    %c0_36 = arith.constant 0 : index
    %33 = vector.load %arg5[%c0_34, %c4, %c0_35, %c0_36] : memref<1x6x32x16xbf16, #tpu.memory_space<vmem>>, vector<1x1x32x16xbf16>
    %34 = vector.shape_cast %33 : vector<1x1x32x16xbf16> to vector<32x16xbf16>
    %c0_37 = arith.constant 0 : index
    %c4_38 = arith.constant 4 : index
    %c0_39 = arith.constant 0 : index
    %c0_40 = arith.constant 0 : index
    %35 = vector.load %arg6[%c0_37, %c4_38, %c0_39, %c0_40] : memref<1x6x1x16xf32, #tpu.memory_space<vmem>>, vector<1x1x1x16xf32>
    %36 = vector.shape_cast %35 : vector<1x1x1x16xf32> to vector<1x16xf32>
    %cst_41 = arith.constant dense<0.000000e+00> : vector<16x16xf32>
    %37 = tpu.matmul %4, %34, %cst_41 {dimension_numbers = #tpu.dot_dimension_numbers<[1], [0], [0], [1], [0, 0, 1, 1], [], []>} : vector<16x32xbf16>, vector<32x16xbf16>, vector<16x16xf32> -> vector<16x16xf32>
    %38 = vector.broadcast %36 : vector<1x16xf32> to vector<16x16xf32>
    %39 = arith.addf %37, %38 : vector<16x16xf32>
    %c0_42 = arith.constant 0 : index
    %c5 = arith.constant 5 : index
    %c0_43 = arith.constant 0 : index
    %c0_44 = arith.constant 0 : index
    %40 = vector.load %arg5[%c0_42, %c5, %c0_43, %c0_44] : memref<1x6x32x16xbf16, #tpu.memory_space<vmem>>, vector<1x1x32x16xbf16>
    %41 = vector.shape_cast %40 : vector<1x1x32x16xbf16> to vector<32x16xbf16>
    %c0_45 = arith.constant 0 : index
    %c5_46 = arith.constant 5 : index
    %c0_47 = arith.constant 0 : index
    %c0_48 = arith.constant 0 : index
    %42 = vector.load %arg6[%c0_45, %c5_46, %c0_47, %c0_48] : memref<1x6x1x16xf32, #tpu.memory_space<vmem>>, vector<1x1x1x16xf32>
    %43 = vector.shape_cast %42 : vector<1x1x1x16xf32> to vector<1x16xf32>
    %cst_49 = arith.constant dense<0.000000e+00> : vector<16x16xf32>
    %44 = tpu.matmul %4, %41, %cst_49 {dimension_numbers = #tpu.dot_dimension_numbers<[1], [0], [0], [1], [0, 0, 1, 1], [], []>} : vector<16x32xbf16>, vector<32x16xbf16>, vector<16x16xf32> -> vector<16x16xf32>
    %45 = vector.broadcast %43 : vector<1x16xf32> to vector<16x16xf32>
    %46 = arith.addf %44, %45 : vector<16x16xf32>
    %c0_50 = arith.constant 0 : index
    %c0_51 = arith.constant 0 : index
    %47 = vector.load %arg2[%c0_50, %c0_51] : memref<2x8xf32, #tpu.memory_space<vmem>>, vector<1x8xf32>
    %48 = vector.extract_strided_slice %11 {offsets = [0, 0], sizes = [8, 16], strides = [1, 1]} : vector<16x16xf32> to vector<8x16xf32>
    %49 = vector.extract_strided_slice %18 {offsets = [0, 0], sizes = [8, 16], strides = [1, 1]} : vector<16x16xf32> to vector<8x16xf32>
    %50 = vector.extract_strided_slice %25 {offsets = [0, 0], sizes = [8, 16], strides = [1, 1]} : vector<16x16xf32> to vector<8x16xf32>
    %cst_52 = arith.constant dense<0.000000e+00> : vector<8x8xf32>
    %51 = tpu.matmul %48, %49, %cst_52 {dimension_numbers = #tpu.dot_dimension_numbers<[1], [1], [0], [0], [0, 0, 1, 0], [], []>} : vector<8x16xf32>, vector<8x16xf32>, vector<8x8xf32> -> vector<8x8xf32>
    %cst_53 = arith.constant 2.500000e-01 : f32
    %52 = vector.broadcast %cst_53 : f32 to vector<8x8xf32>
    %53 = arith.mulf %51, %52 : vector<8x8xf32>
    %54 = vector.broadcast %47 : vector<1x8xf32> to vector<8x8xf32>
    %55 = arith.addf %53, %54 : vector<8x8xf32>
    %cst_54 = arith.constant dense<0xFF800000> : vector<8xf32>
    %56 = vector.multi_reduction <maximumf>, %55, %cst_54 [1] : vector<8x8xf32> to vector<8xf32>
    %57 = vector.shape_cast %56 : vector<8xf32> to vector<8x1xf32>
    %58 = vector.broadcast %57 : vector<8x1xf32> to vector<8x8xf32>
    %59 = arith.subf %55, %58 : vector<8x8xf32>
    %60 = math.exp %59 : vector<8x8xf32>
    %cst_55 = arith.constant dense<0.000000e+00> : vector<8xf32>
    %61 = vector.multi_reduction <add>, %60, %cst_55 [1] : vector<8x8xf32> to vector<8xf32>
    %62 = vector.shape_cast %61 : vector<8xf32> to vector<8x1xf32>
    %63 = vector.broadcast %62 : vector<8x1xf32> to vector<8x8xf32>
    %64 = arith.divf %60, %63 : vector<8x8xf32>
    %cst_56 = arith.constant dense<0.000000e+00> : vector<8x16xf32>
    %65 = tpu.matmul %64, %50, %cst_56 {dimension_numbers = #tpu.dot_dimension_numbers<[1], [0], [0], [1], [0, 0, 1, 1], [], []>} : vector<8x8xf32>, vector<8x16xf32>, vector<8x16xf32> -> vector<8x16xf32>
    %66 = arith.truncf %65 : vector<8x16xf32> to vector<8x16xbf16>
    %c0_57 = arith.constant 0 : index
    %c0_58 = arith.constant 0 : index
    %c0_59 = arith.constant 0 : index
    %c0_60 = arith.constant 0 : index
    %67 = vector.load %arg7[%c0_57, %c0_58, %c0_59, %c0_60] : memref<1x2x16x32xbf16, #tpu.memory_space<vmem>>, vector<1x1x16x32xbf16>
    %68 = vector.shape_cast %67 : vector<1x1x16x32xbf16> to vector<16x32xbf16>
    %cst_61 = arith.constant dense<0.000000e+00> : vector<8x32xf32>
    %69 = tpu.matmul %66, %68, %cst_61 {dimension_numbers = #tpu.dot_dimension_numbers<[1], [0], [0], [1], [0, 0, 1, 1], [], []>} : vector<8x16xbf16>, vector<16x32xbf16>, vector<8x32xf32> -> vector<8x32xf32>
    %70 = vector.extract_strided_slice %32 {offsets = [0, 0], sizes = [8, 16], strides = [1, 1]} : vector<16x16xf32> to vector<8x16xf32>
    %71 = vector.extract_strided_slice %39 {offsets = [0, 0], sizes = [8, 16], strides = [1, 1]} : vector<16x16xf32> to vector<8x16xf32>
    %72 = vector.extract_strided_slice %46 {offsets = [0, 0], sizes = [8, 16], strides = [1, 1]} : vector<16x16xf32> to vector<8x16xf32>
    %cst_62 = arith.constant dense<0.000000e+00> : vector<8x8xf32>
    %73 = tpu.matmul %70, %71, %cst_62 {dimension_numbers = #tpu.dot_dimension_numbers<[1], [1], [0], [0], [0, 0, 1, 0], [], []>} : vector<8x16xf32>, vector<8x16xf32>, vector<8x8xf32> -> vector<8x8xf32>
    %cst_63 = arith.constant 2.500000e-01 : f32
    %74 = vector.broadcast %cst_63 : f32 to vector<8x8xf32>
    %75 = arith.mulf %73, %74 : vector<8x8xf32>
    %76 = vector.broadcast %47 : vector<1x8xf32> to vector<8x8xf32>
    %77 = arith.addf %75, %76 : vector<8x8xf32>
    %cst_64 = arith.constant dense<0xFF800000> : vector<8xf32>
    %78 = vector.multi_reduction <maximumf>, %77, %cst_64 [1] : vector<8x8xf32> to vector<8xf32>
    %79 = vector.shape_cast %78 : vector<8xf32> to vector<8x1xf32>
    %80 = vector.broadcast %79 : vector<8x1xf32> to vector<8x8xf32>
    %81 = arith.subf %77, %80 : vector<8x8xf32>
    %82 = math.exp %81 : vector<8x8xf32>
    %cst_65 = arith.constant dense<0.000000e+00> : vector<8xf32>
    %83 = vector.multi_reduction <add>, %82, %cst_65 [1] : vector<8x8xf32> to vector<8xf32>
    %84 = vector.shape_cast %83 : vector<8xf32> to vector<8x1xf32>
    %85 = vector.broadcast %84 : vector<8x1xf32> to vector<8x8xf32>
    %86 = arith.divf %82, %85 : vector<8x8xf32>
    %cst_66 = arith.constant dense<0.000000e+00> : vector<8x16xf32>
    %87 = tpu.matmul %86, %72, %cst_66 {dimension_numbers = #tpu.dot_dimension_numbers<[1], [0], [0], [1], [0, 0, 1, 1], [], []>} : vector<8x8xf32>, vector<8x16xf32>, vector<8x16xf32> -> vector<8x16xf32>
    %88 = arith.truncf %87 : vector<8x16xf32> to vector<8x16xbf16>
    %c0_67 = arith.constant 0 : index
    %c1_68 = arith.constant 1 : index
    %c0_69 = arith.constant 0 : index
    %c0_70 = arith.constant 0 : index
    %89 = vector.load %arg7[%c0_67, %c1_68, %c0_69, %c0_70] : memref<1x2x16x32xbf16, #tpu.memory_space<vmem>>, vector<1x1x16x32xbf16>
    %90 = vector.shape_cast %89 : vector<1x1x16x32xbf16> to vector<16x32xbf16>
    %cst_71 = arith.constant dense<0.000000e+00> : vector<8x32xf32>
    %91 = tpu.matmul %88, %90, %cst_71 {dimension_numbers = #tpu.dot_dimension_numbers<[1], [0], [0], [1], [0, 0, 1, 1], [], []>} : vector<8x16xbf16>, vector<16x32xbf16>, vector<8x32xf32> -> vector<8x32xf32>
    %92 = arith.addf %69, %91 : vector<8x32xf32>
    %c1_72 = arith.constant 1 : index
    %c0_73 = arith.constant 0 : index
    %93 = vector.load %arg2[%c1_72, %c0_73] : memref<2x8xf32, #tpu.memory_space<vmem>>, vector<1x8xf32>
    %94 = vector.extract_strided_slice %11 {offsets = [8, 0], sizes = [8, 16], strides = [1, 1]} : vector<16x16xf32> to vector<8x16xf32>
    %95 = vector.extract_strided_slice %18 {offsets = [8, 0], sizes = [8, 16], strides = [1, 1]} : vector<16x16xf32> to vector<8x16xf32>
    %96 = vector.extract_strided_slice %25 {offsets = [8, 0], sizes = [8, 16], strides = [1, 1]} : vector<16x16xf32> to vector<8x16xf32>
    %cst_74 = arith.constant dense<0.000000e+00> : vector<8x8xf32>
    %97 = tpu.matmul %94, %95, %cst_74 {dimension_numbers = #tpu.dot_dimension_numbers<[1], [1], [0], [0], [0, 0, 1, 0], [], []>} : vector<8x16xf32>, vector<8x16xf32>, vector<8x8xf32> -> vector<8x8xf32>
    %cst_75 = arith.constant 2.500000e-01 : f32
    %98 = vector.broadcast %cst_75 : f32 to vector<8x8xf32>
    %99 = arith.mulf %97, %98 : vector<8x8xf32>
    %100 = vector.broadcast %93 : vector<1x8xf32> to vector<8x8xf32>
    %101 = arith.addf %99, %100 : vector<8x8xf32>
    %cst_76 = arith.constant dense<0xFF800000> : vector<8xf32>
    %102 = vector.multi_reduction <maximumf>, %101, %cst_76 [1] : vector<8x8xf32> to vector<8xf32>
    %103 = vector.shape_cast %102 : vector<8xf32> to vector<8x1xf32>
    %104 = vector.broadcast %103 : vector<8x1xf32> to vector<8x8xf32>
    %105 = arith.subf %101, %104 : vector<8x8xf32>
    %106 = math.exp %105 : vector<8x8xf32>
    %cst_77 = arith.constant dense<0.000000e+00> : vector<8xf32>
    %107 = vector.multi_reduction <add>, %106, %cst_77 [1] : vector<8x8xf32> to vector<8xf32>
    %108 = vector.shape_cast %107 : vector<8xf32> to vector<8x1xf32>
    %109 = vector.broadcast %108 : vector<8x1xf32> to vector<8x8xf32>
    %110 = arith.divf %106, %109 : vector<8x8xf32>
    %cst_78 = arith.constant dense<0.000000e+00> : vector<8x16xf32>
    %111 = tpu.matmul %110, %96, %cst_78 {dimension_numbers = #tpu.dot_dimension_numbers<[1], [0], [0], [1], [0, 0, 1, 1], [], []>} : vector<8x8xf32>, vector<8x16xf32>, vector<8x16xf32> -> vector<8x16xf32>
    %112 = arith.truncf %111 : vector<8x16xf32> to vector<8x16xbf16>
    %c0_79 = arith.constant 0 : index
    %c0_80 = arith.constant 0 : index
    %c0_81 = arith.constant 0 : index
    %c0_82 = arith.constant 0 : index
    %113 = vector.load %arg7[%c0_79, %c0_80, %c0_81, %c0_82] : memref<1x2x16x32xbf16, #tpu.memory_space<vmem>>, vector<1x1x16x32xbf16>
    %114 = vector.shape_cast %113 : vector<1x1x16x32xbf16> to vector<16x32xbf16>
    %cst_83 = arith.constant dense<0.000000e+00> : vector<8x32xf32>
    %115 = tpu.matmul %112, %114, %cst_83 {dimension_numbers = #tpu.dot_dimension_numbers<[1], [0], [0], [1], [0, 0, 1, 1], [], []>} : vector<8x16xbf16>, vector<16x32xbf16>, vector<8x32xf32> -> vector<8x32xf32>
    %116 = vector.extract_strided_slice %32 {offsets = [8, 0], sizes = [8, 16], strides = [1, 1]} : vector<16x16xf32> to vector<8x16xf32>
    %117 = vector.extract_strided_slice %39 {offsets = [8, 0], sizes = [8, 16], strides = [1, 1]} : vector<16x16xf32> to vector<8x16xf32>
    %118 = vector.extract_strided_slice %46 {offsets = [8, 0], sizes = [8, 16], strides = [1, 1]} : vector<16x16xf32> to vector<8x16xf32>
    %cst_84 = arith.constant dense<0.000000e+00> : vector<8x8xf32>
    %119 = tpu.matmul %116, %117, %cst_84 {dimension_numbers = #tpu.dot_dimension_numbers<[1], [1], [0], [0], [0, 0, 1, 0], [], []>} : vector<8x16xf32>, vector<8x16xf32>, vector<8x8xf32> -> vector<8x8xf32>
    %cst_85 = arith.constant 2.500000e-01 : f32
    %120 = vector.broadcast %cst_85 : f32 to vector<8x8xf32>
    %121 = arith.mulf %119, %120 : vector<8x8xf32>
    %122 = vector.broadcast %93 : vector<1x8xf32> to vector<8x8xf32>
    %123 = arith.addf %121, %122 : vector<8x8xf32>
    %cst_86 = arith.constant dense<0xFF800000> : vector<8xf32>
    %124 = vector.multi_reduction <maximumf>, %123, %cst_86 [1] : vector<8x8xf32> to vector<8xf32>
    %125 = vector.shape_cast %124 : vector<8xf32> to vector<8x1xf32>
    %126 = vector.broadcast %125 : vector<8x1xf32> to vector<8x8xf32>
    %127 = arith.subf %123, %126 : vector<8x8xf32>
    %128 = math.exp %127 : vector<8x8xf32>
    %cst_87 = arith.constant dense<0.000000e+00> : vector<8xf32>
    %129 = vector.multi_reduction <add>, %128, %cst_87 [1] : vector<8x8xf32> to vector<8xf32>
    %130 = vector.shape_cast %129 : vector<8xf32> to vector<8x1xf32>
    %131 = vector.broadcast %130 : vector<8x1xf32> to vector<8x8xf32>
    %132 = arith.divf %128, %131 : vector<8x8xf32>
    %cst_88 = arith.constant dense<0.000000e+00> : vector<8x16xf32>
    %133 = tpu.matmul %132, %118, %cst_88 {dimension_numbers = #tpu.dot_dimension_numbers<[1], [0], [0], [1], [0, 0, 1, 1], [], []>} : vector<8x8xf32>, vector<8x16xf32>, vector<8x16xf32> -> vector<8x16xf32>
    %134 = arith.truncf %133 : vector<8x16xf32> to vector<8x16xbf16>
    %c0_89 = arith.constant 0 : index
    %c1_90 = arith.constant 1 : index
    %c0_91 = arith.constant 0 : index
    %c0_92 = arith.constant 0 : index
    %135 = vector.load %arg7[%c0_89, %c1_90, %c0_91, %c0_92] : memref<1x2x16x32xbf16, #tpu.memory_space<vmem>>, vector<1x1x16x32xbf16>
    %136 = vector.shape_cast %135 : vector<1x1x16x32xbf16> to vector<16x32xbf16>
    %cst_93 = arith.constant dense<0.000000e+00> : vector<8x32xf32>
    %137 = tpu.matmul %134, %136, %cst_93 {dimension_numbers = #tpu.dot_dimension_numbers<[1], [0], [0], [1], [0, 0, 1, 1], [], []>} : vector<8x16xbf16>, vector<16x32xbf16>, vector<8x32xf32> -> vector<8x32xf32>
    %138 = arith.addf %115, %137 : vector<8x32xf32>
    %139 = tpu.concatenate %92, %138 in 0 : vector<8x32xf32>, vector<8x32xf32> -> vector<16x32xf32>
    %c0_94 = arith.constant 0 : index
    %c0_95 = arith.constant 0 : index
    %c0_96 = arith.constant 0 : index
    %140 = vector.load %arg8[%c0_94, %c0_95, %c0_96] : memref<1x8x32xf32, #tpu.memory_space<vmem>>, vector<1x8x32xf32>
    %141 = vector.shape_cast %140 : vector<1x8x32xf32> to vector<8x32xf32>
    %142 = vector.extract_strided_slice %141 {offsets = [0, 0], sizes = [1, 32], strides = [1, 1]} : vector<8x32xf32> to vector<1x32xf32>
    %143 = vector.extract_strided_slice %141 {offsets = [1, 0], sizes = [1, 32], strides = [1, 1]} : vector<8x32xf32> to vector<1x32xf32>
    %144 = vector.extract_strided_slice %141 {offsets = [2, 0], sizes = [1, 32], strides = [1, 1]} : vector<8x32xf32> to vector<1x32xf32>
    %145 = vector.extract_strided_slice %141 {offsets = [3, 0], sizes = [1, 32], strides = [1, 1]} : vector<8x32xf32> to vector<1x32xf32>
    %146 = vector.extract_strided_slice %141 {offsets = [4, 0], sizes = [1, 32], strides = [1, 1]} : vector<8x32xf32> to vector<1x32xf32>
    %147 = vector.extract_strided_slice %141 {offsets = [5, 0], sizes = [1, 32], strides = [1, 1]} : vector<8x32xf32> to vector<1x32xf32>
    %148 = vector.broadcast %142 : vector<1x32xf32> to vector<16x32xf32>
    %149 = arith.addf %139, %148 : vector<16x32xf32>
    %150 = arith.addf %149, %3 : vector<16x32xf32>
    %cst_97 = arith.constant dense<0.000000e+00> : vector<16xf32>
    %151 = vector.multi_reduction <add>, %150, %cst_97 [1] : vector<16x32xf32> to vector<16xf32>
    %152 = vector.shape_cast %151 : vector<16xf32> to vector<16x1xf32>
    %cst_98 = arith.constant 3.200000e+01 : f32
    %153 = vector.broadcast %cst_98 : f32 to vector<16x1xf32>
    %154 = arith.divf %152, %153 : vector<16x1xf32>
    %155 = vector.broadcast %154 : vector<16x1xf32> to vector<16x32xf32>
    %156 = arith.subf %150, %155 : vector<16x32xf32>
    %157 = arith.mulf %156, %156 : vector<16x32xf32>
    %cst_99 = arith.constant dense<0.000000e+00> : vector<16xf32>
    %158 = vector.multi_reduction <add>, %157, %cst_99 [1] : vector<16x32xf32> to vector<16xf32>
    %159 = vector.shape_cast %158 : vector<16xf32> to vector<16x1xf32>
    %cst_100 = arith.constant 3.200000e+01 : f32
    %160 = vector.broadcast %cst_100 : f32 to vector<16x1xf32>
    %161 = arith.divf %159, %160 : vector<16x1xf32>
    %cst_101 = arith.constant 9.99999996E-13 : f32
    %162 = vector.broadcast %cst_101 : f32 to vector<16x1xf32>
    %163 = arith.addf %161, %162 : vector<16x1xf32>
    %164 = math.rsqrt %163 : vector<16x1xf32>
    %165 = vector.broadcast %164 : vector<16x1xf32> to vector<16x32xf32>
    %166 = arith.mulf %156, %165 : vector<16x32xf32>
    %167 = vector.broadcast %143 : vector<1x32xf32> to vector<16x32xf32>
    %168 = arith.mulf %166, %167 : vector<16x32xf32>
    %169 = vector.broadcast %144 : vector<1x32xf32> to vector<16x32xf32>
    %170 = arith.addf %168, %169 : vector<16x32xf32>
    %171 = arith.truncf %170 : vector<16x32xf32> to vector<16x32xbf16>
    %c0_102 = arith.constant 0 : index
    %c0_103 = arith.constant 0 : index
    %c0_104 = arith.constant 0 : index
    %172 = vector.load %arg9[%c0_102, %c0_103, %c0_104] : memref<1x32x64xbf16, #tpu.memory_space<vmem>>, vector<1x32x64xbf16>
    %173 = vector.shape_cast %172 : vector<1x32x64xbf16> to vector<32x64xbf16>
    %cst_105 = arith.constant dense<0.000000e+00> : vector<16x64xf32>
    %174 = tpu.matmul %171, %173, %cst_105 {dimension_numbers = #tpu.dot_dimension_numbers<[1], [0], [0], [1], [0, 0, 1, 1], [], []>} : vector<16x32xbf16>, vector<32x64xbf16>, vector<16x64xf32> -> vector<16x64xf32>
    %c0_106 = arith.constant 0 : index
    %c0_107 = arith.constant 0 : index
    %c0_108 = arith.constant 0 : index
    %175 = vector.load %arg10[%c0_106, %c0_107, %c0_108] : memref<1x1x64xf32, #tpu.memory_space<vmem>>, vector<1x1x64xf32>
    %176 = vector.shape_cast %175 : vector<1x1x64xf32> to vector<1x64xf32>
    %177 = vector.broadcast %176 : vector<1x64xf32> to vector<16x64xf32>
    %178 = arith.addf %174, %177 : vector<16x64xf32>
    %cst_109 = arith.constant 5.000000e-01 : f32
    %179 = vector.broadcast %cst_109 : f32 to vector<16x64xf32>
    %180 = arith.mulf %179, %178 : vector<16x64xf32>
    %cst_110 = arith.constant 4.471500e-02 : f32
    %181 = vector.broadcast %cst_110 : f32 to vector<16x64xf32>
    %182 = arith.mulf %181, %178 : vector<16x64xf32>
    %183 = arith.mulf %182, %178 : vector<16x64xf32>
    %184 = arith.mulf %183, %178 : vector<16x64xf32>
    %185 = arith.addf %178, %184 : vector<16x64xf32>
    %cst_111 = arith.constant 0.797884583 : f32
    %186 = vector.broadcast %cst_111 : f32 to vector<16x64xf32>
    %187 = arith.mulf %186, %185 : vector<16x64xf32>
    %188 = math.tanh %187 : vector<16x64xf32>
    %cst_112 = arith.constant 1.000000e+00 : f32
    %189 = vector.broadcast %cst_112 : f32 to vector<16x64xf32>
    %190 = arith.addf %189, %188 : vector<16x64xf32>
    %191 = arith.mulf %180, %190 : vector<16x64xf32>
    %192 = arith.truncf %191 : vector<16x64xf32> to vector<16x64xbf16>
    %c0_113 = arith.constant 0 : index
    %c0_114 = arith.constant 0 : index
    %c0_115 = arith.constant 0 : index
    %193 = vector.load %arg11[%c0_113, %c0_114, %c0_115] : memref<1x64x32xbf16, #tpu.memory_space<vmem>>, vector<1x64x32xbf16>
    %194 = vector.shape_cast %193 : vector<1x64x32xbf16> to vector<64x32xbf16>
    %cst_116 = arith.constant dense<0.000000e+00> : vector<16x32xf32>
    %195 = tpu.matmul %192, %194, %cst_116 {dimension_numbers = #tpu.dot_dimension_numbers<[1], [0], [0], [1], [0, 0, 1, 1], [], []>} : vector<16x64xbf16>, vector<64x32xbf16>, vector<16x32xf32> -> vector<16x32xf32>
    %196 = vector.broadcast %145 : vector<1x32xf32> to vector<16x32xf32>
    %197 = arith.addf %195, %196 : vector<16x32xf32>
    %198 = arith.addf %197, %170 : vector<16x32xf32>
    %cst_117 = arith.constant dense<0.000000e+00> : vector<16xf32>
    %199 = vector.multi_reduction <add>, %198, %cst_117 [1] : vector<16x32xf32> to vector<16xf32>
    %200 = vector.shape_cast %199 : vector<16xf32> to vector<16x1xf32>
    %cst_118 = arith.constant 3.200000e+01 : f32
    %201 = vector.broadcast %cst_118 : f32 to vector<16x1xf32>
    %202 = arith.divf %200, %201 : vector<16x1xf32>
    %203 = vector.broadcast %202 : vector<16x1xf32> to vector<16x32xf32>
    %204 = arith.subf %198, %203 : vector<16x32xf32>
    %205 = arith.mulf %204, %204 : vector<16x32xf32>
    %cst_119 = arith.constant dense<0.000000e+00> : vector<16xf32>
    %206 = vector.multi_reduction <add>, %205, %cst_119 [1] : vector<16x32xf32> to vector<16xf32>
    %207 = vector.shape_cast %206 : vector<16xf32> to vector<16x1xf32>
    %cst_120 = arith.constant 3.200000e+01 : f32
    %208 = vector.broadcast %cst_120 : f32 to vector<16x1xf32>
    %209 = arith.divf %207, %208 : vector<16x1xf32>
    %cst_121 = arith.constant 9.99999996E-13 : f32
    %210 = vector.broadcast %cst_121 : f32 to vector<16x1xf32>
    %211 = arith.addf %209, %210 : vector<16x1xf32>
    %212 = math.rsqrt %211 : vector<16x1xf32>
    %213 = vector.broadcast %212 : vector<16x1xf32> to vector<16x32xf32>
    %214 = arith.mulf %204, %213 : vector<16x32xf32>
    %215 = vector.broadcast %146 : vector<1x32xf32> to vector<16x32xf32>
    %216 = arith.mulf %214, %215 : vector<16x32xf32>
    %217 = vector.broadcast %147 : vector<1x32xf32> to vector<16x32xf32>
    %218 = arith.addf %216, %217 : vector<16x32xf32>
    %c0_122 = arith.constant 0 : index
    %c0_123 = arith.constant 0 : index
    %219 = vector.load %arg15[%c0_122, %c0_123] : memref<16x32xf32, #tpu.memory_space<vmem>>, vector<16x32xf32>
    tpu.vector_store %arg15[%c0_122, %c0_123], %218 {strides = array<i32>} : memref<16x32xf32, #tpu.memory_space<vmem>>, vector<16x32xf32>,
    %c1_i32 = arith.constant 1 : i32
    %220 = arith.cmpi eq, %arg0, %c1_i32 : i32
    %221 = arith.extui %220 : i1 to i32
    %c0_i32_124 = arith.constant 0 : i32
    %222 = arith.cmpi ne, %221, %c0_i32_124 : i32
    scf.if %222 {
      %223 = vector.extract_strided_slice %218 {offsets = [0, 0], sizes = [1, 32], strides = [1, 1]} : vector<16x32xf32> to vector<1x32xf32>
      %224 = vector.extract_strided_slice %218 {offsets = [8, 0], sizes = [1, 32], strides = [1, 1]} : vector<16x32xf32> to vector<1x32xf32>
      %225 = tpu.concatenate %223, %224 in 0 : vector<1x32xf32>, vector<1x32xf32> -> vector<2x32xf32>
      %c0_125 = arith.constant 0 : index
      %c0_126 = arith.constant 0 : index
      %226 = vector.load %arg12[%c0_125, %c0_126] : memref<32x2xf32, #tpu.memory_space<vmem>>, vector<32x2xf32>
      %cst_127 = arith.constant dense<0.000000e+00> : vector<2x2xf32>
      %227 = tpu.matmul %225, %226, %cst_127 {dimension_numbers = #tpu.dot_dimension_numbers<[1], [0], [0], [1], [0, 0, 1, 1], [], []>} : vector<2x32xf32>, vector<32x2xf32>, vector<2x2xf32> -> vector<2x2xf32>
      %c0_128 = arith.constant 0 : index
      %c0_129 = arith.constant 0 : index
      %228 = vector.load %arg13[%c0_128, %c0_129] : memref<1x2xf32, #tpu.memory_space<vmem>>, vector<1x2xf32>
      %229 = vector.broadcast %228 : vector<1x2xf32> to vector<2x2xf32>
      %230 = arith.addf %227, %229 : vector<2x2xf32>
      %cst_130 = arith.constant dense<0xFF800000> : vector<2xf32>
      %231 = vector.multi_reduction <maximumf>, %230, %cst_130 [1] : vector<2x2xf32> to vector<2xf32>
      %232 = vector.shape_cast %231 : vector<2xf32> to vector<2x1xf32>
      %233 = vector.broadcast %232 : vector<2x1xf32> to vector<2x2xf32>
      %234 = arith.subf %230, %233 : vector<2x2xf32>
      %235 = math.exp %234 : vector<2x2xf32>
      %cst_131 = arith.constant dense<0.000000e+00> : vector<2xf32>
      %236 = vector.multi_reduction <add>, %235, %cst_131 [1] : vector<2x2xf32> to vector<2xf32>
      %237 = vector.shape_cast %236 : vector<2xf32> to vector<2x1xf32>
      %238 = vector.broadcast %237 : vector<2x1xf32> to vector<2x2xf32>
      %239 = arith.divf %235, %238 : vector<2x2xf32>
      %c0_132 = arith.constant 0 : index
      %c0_133 = arith.constant 0 : index
      %240 = vector.load %arg14[%c0_132, %c0_133] : memref<2x2xf32, #tpu.memory_space<vmem>>, vector<2x2xf32>
      tpu.vector_store %arg14[%c0_132, %c0_133], %239 {strides = array<i32>} : memref<2x2xf32, #tpu.memory_space<vmem>>, vector<2x2xf32>,
    } else {
    }
    return
  }
  func.func @transform_0(%arg0: i32) -> (i32, i32) {
    %c0_i32 = arith.constant 0 : i32
    %c0_i32_0 = arith.constant 0 : i32
    %c0_i32_1 = arith.constant 0 : i32
    return %c0_i32, %c0_i32_0 : i32, i32
  }
  func.func @transform_1(%arg0: i32) -> (i32, i32) {
    %c0_i32 = arith.constant 0 : i32
    %c0_i32_0 = arith.constant 0 : i32
    %c0_i32_1 = arith.constant 0 : i32
    return %c0_i32, %c0_i32_0 : i32, i32
  }
  func.func @transform_2(%arg0: i32) -> (i32, i32) {
    %c0_i32 = arith.constant 0 : i32
    %c0_i32_0 = arith.constant 0 : i32
    %c0_i32_1 = arith.constant 0 : i32
    return %c0_i32, %c0_i32_0 : i32, i32
  }
  func.func @transform_3(%arg0: i32) -> (i32, i32) {
    %c0_i32 = arith.constant 0 : i32
    %c0_i32_0 = arith.constant 0 : i32
    %c0_i32_1 = arith.constant 0 : i32
    return %c0_i32, %c0_i32_0 : i32, i32
  }
  func.func @transform_4(%arg0: i32) -> (i32, i32, i32, i32) {
    %c0_i32 = arith.constant 0 : i32
    %c0_i32_0 = arith.constant 0 : i32
    %c0_i32_1 = arith.constant 0 : i32
    %c0_i32_2 = arith.constant 0 : i32
    return %arg0, %c0_i32, %c0_i32_0, %c0_i32_1 : i32, i32, i32, i32
  }
  func.func @transform_5(%arg0: i32) -> (i32, i32, i32, i32) {
    %c0_i32 = arith.constant 0 : i32
    %c0_i32_0 = arith.constant 0 : i32
    %c0_i32_1 = arith.constant 0 : i32
    %c0_i32_2 = arith.constant 0 : i32
    return %arg0, %c0_i32, %c0_i32_0, %c0_i32_1 : i32, i32, i32, i32
  }
  func.func @transform_6(%arg0: i32) -> (i32, i32, i32, i32) {
    %c0_i32 = arith.constant 0 : i32
    %c0_i32_0 = arith.constant 0 : i32
    %c0_i32_1 = arith.constant 0 : i32
    %c0_i32_2 = arith.constant 0 : i32
    return %arg0, %c0_i32, %c0_i32_0, %c0_i32_1 : i32, i32, i32, i32
  }
  func.func @transform_7(%arg0: i32) -> (i32, i32, i32) {
    %c0_i32 = arith.constant 0 : i32
    %c0_i32_0 = arith.constant 0 : i32
    %c0_i32_1 = arith.constant 0 : i32
    return %arg0, %c0_i32, %c0_i32_0 : i32, i32, i32
  }
  func.func @transform_8(%arg0: i32) -> (i32, i32, i32) {
    %c0_i32 = arith.constant 0 : i32
    %c0_i32_0 = arith.constant 0 : i32
    %c0_i32_1 = arith.constant 0 : i32
    return %arg0, %c0_i32, %c0_i32_0 : i32, i32, i32
  }
  func.func @transform_9(%arg0: i32) -> (i32, i32, i32) {
    %c0_i32 = arith.constant 0 : i32
    %c0_i32_0 = arith.constant 0 : i32
    %c0_i32_1 = arith.constant 0 : i32
    return %arg0, %c0_i32, %c0_i32_0 : i32, i32, i32
  }
  func.func @transform_10(%arg0: i32) -> (i32, i32, i32) {
    %c0_i32 = arith.constant 0 : i32
    %c0_i32_0 = arith.constant 0 : i32
    %c0_i32_1 = arith.constant 0 : i32
    return %arg0, %c0_i32, %c0_i32_0 : i32, i32, i32
  }
  func.func @transform_11(%arg0: i32) -> (i32, i32) {
    %c0_i32 = arith.constant 0 : i32
    %c0_i32_0 = arith.constant 0 : i32
    %c0_i32_1 = arith.constant 0 : i32
    return %c0_i32, %c0_i32_0 : i32, i32
  }
  func.func @transform_12(%arg0: i32) -> (i32, i32) {
    %c0_i32 = arith.constant 0 : i32
    %c0_i32_0 = arith.constant 0 : i32
    %c0_i32_1 = arith.constant 0 : i32
    return %c0_i32, %c0_i32_0 : i32, i32
  }
  func.func @transform_13(%arg0: i32) -> (i32, i32) {
    %c0_i32 = arith.constant 0 : i32
    %c0_i32_0 = arith.constant 0 : i32
    %c0_i32_1 = arith.constant 0 : i32
    return %c0_i32, %c0_i32_0 : i32, i32
  }
}

</mosaic_0001>

<bundles_post_ra>
// kernel: model_forward.1
= control target key start
LH: loop header
LB: loop body
LE: loop exit
PB: predicated region body
PF: predicated region fallthrough
CT: control target
= control target key end

     0   :  { %s3145_s0 = inlined_call_operand.vmem [shape: f32[16,32], index: 0, kind: input, shape index: {}]   ;;  %s3146_s1 = inlined_call_operand.vmem [shape: f32[2,8], index: 1, kind: input, shape index: {}]   ;;  %s3147_s2 = inlined_call_operand.vmem [shape: f32[1,32], index: 2, kind: input, shape index: {}]   ;;  %s3148_s3 = inlined_call_operand.vmem [shape: f32[1,32], index: 3, kind: input, shape index: {}]   ;;  %s3149_s4 = inlined_call_operand.vmem [shape: bf16[2,6,32,16], index: 4, kind: input, shape index: {}]   ;;  %s3150_s5 = inlined_call_operand.vmem [shape: f32[2,6,1,16], index: 5, kind: input, shape index: {}]   ;;  %s3151_s6 = inlined_call_operand.vmem [shape: bf16[2,2,16,32], index: 6, kind: input, shape index: {}]   ;;  %s3152_s7 = inlined_call_operand.vmem [shape: f32[2,8,32], index: 7, kind: input, shape index: {}]   ;;  %s3153_s8 = inlined_call_operand.vmem [shape: bf16[2,32,64], index: 8, kind: input, shape index: {}]   ;;  %s3154_s9 = inlined_call_operand.vmem [shape: f32[2,1,64], index: 9, kind: input, shape index: {}]   ;;  %s3155_s10 = inlined_call_operand.vmem [shape: bf16[2,64,32], index: 10, kind: input, shape index: {}]   ;;  %s3156_s11 = inlined_call_operand.vmem [shape: f32[32,2], index: 11, kind: input, shape index: {}]   ;;  %s3157_s12 = inlined_call_operand.vmem [shape: f32[1,2], index: 12, kind: input, shape index: {}]   ;;  %s3158_s13 = inlined_call_operand.hbm [shape: f32[2,2], index: 13, kind: output, shape index: {}]  }
   0x1   :  { %3162 = sst [smem:[#allocation7_spill]] %s3149_s4 }
   0x2   :  { %3163 = sst [smem:[#allocation8_spill]] %s3151_s6 }
   0x3   :  { %3164 = sst [smem:[#allocation9_spill]] %s3156_s11 }
   0x4   :  { %3165 = sst [smem:[#allocation10_spill]] %s3157_s12 }
   0x5   :  { %3166 = sst [smem:[#allocation11_spill]] %s3158_s13 }
   0x6   :  { %18 = vsyncpa [#allocation4], 0  ;;  %s2824_s25 = smov 0  }
   0x7 LB: > { %3167 = sst [smem:[#allocation6_spill]] %s2746_s25  ;;  %s2830_s26 = sadd.s32 4294967295, %s2746_s25   ;;  %s2746_s25 = sphi %s2824_s25, %s24_s25  }
   0x8   : > { %p2326_p0 = scmp.ge.s32.totalorder %s2746_s25, 1  ;;  %p439_p1 = scmp.lt.s32.totalorder %s2746_s25, 3 }
   0xa   : > { %p440_p2 = pnand %p2326_p0, %p439_p1 }
   0xb   : > { %p504_p3 = scmp.lt.s32.totalorder (!%p440_p2), %s2830_s26, 1  ;;  %s3168_s6 = sld [smem:[#allocation8_spill]] (!%p440_p2) }
   0xc   : > { %443 = sbr.rel (%p440_p2) target bundleno = 4469 (0x1175), region = 72  ;;  %s3169_s4 = sld [smem:[#allocation7_spill]] (!%p440_p2) }
   0xd   : > { %p2335_p4 = scmp.ne.s32.totalorder (!%p440_p2), %s2830_s26, 0 }
  0x13   : > { %s2836_s27 = scalar_select %p504_p3, %s2830_s26, 1 }
  0x14   : > { %v540_v0 = vld [vmem:[%s3145_s0] sm:$0xff] (!%p2335_p4)  ;;  %vm544_vm0 = vcmask (!%p2335_p4), 261120   ;;  %v541_v1 = vld [vmem:[%s3145_s0 + $0x8] sm:$0xff] (!%p2335_p4) }
  0x15   : > { %s2632_s28 = smul.u32 96, %s2836_s27  ;;  %s2425_s29 = sshll.u32 %s2836_s27, 4  ;;  %v545_v2 = vsel (!%p2335_p4), %vm544_vm0, %v540_v0, 0.0  ;;  %v548_v3 = vsel (!%p2335_p4), %vm544_vm0, %v541_v1, 0.0  ;;  %v2336_v21 = vld [vmem:[%s3147_s2] ss:$0 sm:$0xff] (!%p2335_p4) }
  0x16   : > { %s2633_s30 = smul.u32 6, %s2836_s27  ;;  %s2844_s16 = scalar_lea.vmem %s3168_s6, %s2425_s29  ;;  %546 = vadd.xlane.f32.xlu0 (!%p2335_p4), %v545_v2  ;;  %v2337_v23 = vld [vmem:[%s3148_s3] ss:$0 sm:$0xff] (!%p2335_p4) }
  0x17   : > { %s2849_s19 = scalar_lea.vmem %s3169_s4, %s2632_s28  ;;  %s2330_s20 = sshll.u32 %s2836_s27, 3 }
  0x18   : > { %s2855_s23 = scalar_lea.vmem %s3150_s5, %s2633_s30  ;;  %s2860_s13 = scalar_lea.vmem %s3152_s7, %s2330_s20 }
  0x19   : > { %s2865_s15 = scalar_lea.vmem %s3153_s8, %s2425_s29  ;;  %s529_s28 = scalar_lea.vmem %s3154_s9, %s2836_s27 }
  0x1a   : > { %s2427_s18 = sshll.u32 %s2836_s27, 5  ;;  %539 = sbr.rel (%p2335_p4) target bundleno = 339 (0x153), region = 76  ;;  %549 = vadd.xlane.f32.xlu0 (!%p2335_p4), %v548_v3 }
  0x1b   : > { %s2875_s30 = scalar_lea.vmem %s3155_s10, %s2427_s18 }
  0xa3   : > { %v547_v4 = vpop.xlane.xlu0 %546 }
  0xa4   : > { %v552_v5 = vmul.f32 0.03125, %v547_v4 }
  0xa6   : > { %v554_v6 = vsub.f32 %v540_v0, %v552_v5 }
  0xa7   : > { %v550_v7 = vpop.xlane.xlu0 %549 }
  0xa8   : > { %v553_v8 = vmul.f32 0.03125, %v550_v7  ;;  %v556_v9 = vmul.f32 %v554_v6, %v554_v6 }
  0xaa   : > { %v555_v10 = vsub.f32 %v541_v1, %v553_v8  ;;  %v558_v11 = vsel %vm544_vm0, %v556_v9, 0.0 }
  0xab   : > { %559 = vadd.xlane.f32.xlu1 %v558_v11 }
  0xac   : > { %v557_v12 = vmul.f32 %v555_v10, %v555_v10 }
  0xae   : > { %v561_v13 = vsel %vm544_vm0, %v557_v12, 0.0 }
  0xaf   : > { %562 = vadd.xlane.f32.xlu1 %v561_v13 }
 0x138   : > { %v560_v14 = vpop.xlane.xlu1 %559 }
 0x139   : > { %v564_v15 = vmul.f32 0.03125, %v560_v14 }
 0x13b   : > { %v566_v16 = vadd.f32 1e-12, %v564_v15 }
 0x13c   : > { %v563_v17 = vpop.xlane.xlu1 %562 }
 0x13d   : > { %2654 = vrsqrt.f32 %v566_v16  ;;  %v565_v18 = vmul.f32 0.03125, %v563_v17 }
 0x13f   : > { %v567_v19 = vadd.f32 1e-12, %v565_v18 }
 0x141   : > { %2656 = vrsqrt.f32 %v567_v19 }
 0x147   : > { %v2655_v20 = vpop.eup %2654 }
 0x148   : > { %v570_v22 = vmul.f32 %v2655_v20, %v554_v6 }
 0x14a   : > { %v578_v24 = vmul.f32 %v2336_v21, %v570_v22 }
 0x14b   : > { %v2657_v25 = vpop.eup %2656 }
 0x14c   : > { %v586_v26 = vadd.f32 %v2337_v23, %v578_v24  ;;  %v571_v27 = vmul.f32 %v2657_v25, %v555_v10 }
 0x14e   : > { %588 = vst.msk [vmem:[#allocation2] sm:$0xff] %vm544_vm0, %v586_v26  ;;  %v579_v28 = vmul.f32 %v2336_v21, %v571_v27 }
 0x150   : > { %v587_v29 = vadd.f32 %v2337_v23, %v579_v28 }
 0x152   : > { %589 = vst.msk [vmem:[#allocation2 + $0x8] sm:$0xff] %vm544_vm0, %v587_v29 }
 0x153 PF: > { %v2658_v30 = vld [vmem:[%s2849_s19 + $0x10] sm:$0xff]   ;;  %v2748_v31 = vmov 0.0   ;;  %v2659_v32 = vld [vmem:[%s2849_s19] sm:$0xff]   ;;  %v2660_v33 = vld [vmem:[%s2849_s19 + $0x18] sm:$0xff]   ;;  %vm2749_vm1 = vmmov 0   ;;  %vm616_vm2 = vcmask 261120  }
 0x154   : > { %2491 = vmatprep.subr.bf16.mxu1 %v2748_v31  ;;  %2483 = vmatprep.subr.bf16.mxu0 %v2748_v31  ;;  %v2661_v34 = vld [vmem:[%s2849_s19 + $0x8] sm:$0xff]   ;;  %v2662_v38 = vld [vmem:[%s2849_s19 + $0x20] sm:$0xff]   ;;  %vm992_vm3 = vcmask 130048   ;;  %v2666_v5 = vld [vmem:[%s2849_s19 + $0x30] sm:$0xff]   ;;  %vm1075_vm4 = vcmask 64512   ;;  %vm2015_vm5 = vcmask 523264  }
 0x155   : > { %2492 = vmatpush3.bf16.msra.mxu1 %v2658_v30  ;;  %2495 = vmatprep.mubr.msk.bf16.mxu1 %vm2749_vm1, %v2748_v31  ;;  %v2906_v35 = vld [vmem:[#allocation2] sm:$0xff]  ;;  %v2663_v39 = vld [vmem:[%s2849_s19 + $0x28] sm:$0xff]   ;;  %v2667_v6 = vld [vmem:[%s2849_s19 + $0x38] sm:$0xff]   ;;  %p2418_p5 = scmp.ne.s32.totalorder %s2830_s26, 1 }
 0x156   : > { %2484 = vmatpush3.bf16.msra.mxu0 %v2659_v32  ;;  %2493 = vmatprep.subr.bf16.mxu1 %v2748_v31  ;;  %v2664_v40 = vld [vmem:[%s2849_s19 + $0x40] sm:$0xff]   ;;  %v2665_v41 = vld [vmem:[%s2849_s19 + $0x48] sm:$0xff]   ;;  %v2668_v29 = vld [vmem:[%s2849_s19 + $0x50] sm:$0xff]   ;;  %vm2751_vm6 = vmmov (!%p2418_p5), 0   ;;  %vm2109_vm7 = vcmask (!%p2418_p5), 1040384   ;;  %s3171_s4 = sld [smem:[#allocation10_spill]] (!%p2418_p5) }
 0x157   : > { %2485 = vmatprep.subr.bf16.mxu0 %v2748_v31  ;;  %2487 = vmatprep.mubr.msk.bf16.mxu0 %vm2749_vm1, %v2748_v31  ;;  %v2347_v42 = vld [vmem:[%s2855_s23 + $0x1] ss:$0 sm:$0xff]  ;;  %v2338_v43 = vld [vmem:[%s2855_s23] ss:$0 sm:$0xff]  ;;  %v2356_v56 = vld [vmem:[%s2855_s23 + $0x2] ss:$0 sm:$0xff] }
 0x158   : > { %v2374_v63 = vld [vmem:[%s2855_s23 + $0x4] ss:$0 sm:$0xff]  ;;  %v2389_v8 = vld [vmem:[%s3146_s1] ss:$0 sm:$0xff]  ;;  %v2365_v20 = vld [vmem:[%s2855_s23 + $0x3] ss:$0 sm:$0xff] }
 0x159   : > { %v2908_v36 = vld [vmem:[#allocation2 + $0x8] sm:$0xff]  ;;  %2494 = vmatpush3.bf16.msra.mxu1 %v2660_v33  ;;  %v2669_v30 = vld [vmem:[%s2849_s19 + $0x58] sm:$0xff]   ;;  %vm2195_vm8 = vcmask (!%p2418_p5), 9216  }
 0x15a   : > { %v2914_v37 = vpack.c.bf16 %v2908_v36, %v2906_v35  ;;  %2486 = vmatpush3.bf16.msra.mxu0 %v2661_v34  ;;  %2507 = vmatprep.subr.bf16.mxu1 %v2748_v31 }
 0x15b   : > { %2499 = vmatprep.subr.bf16.mxu0 %v2748_v31 }
 0x15c   : > { %2496 = vmatmul.mubr.msk.bf16.vlgmr.msra.gmra.mrb[0].mxu1 %vm616_vm2, %v2914_v37 }
 0x15d   : > { %2488 = vmatmul.mubr.msk.bf16.vlgmr.msra.gmra.mrb[0].mxu0 %vm616_vm2, %v2914_v37  ;;  %2511 = vmatprep.mubr.msk.bf16.mxu1 %vm2749_vm1, %v2748_v31 }
 0x15e   : > { %2500 = vmatpush3.bf16.msra.mxu0 %v2662_v38  ;;  %2503 = vmatprep.mubr.msk.bf16.mxu0 %vm2749_vm1, %v2748_v31 }
 0x15f   : > { %2501 = vmatprep.subr.bf16.mxu0 %v2748_v31  ;;  %2508 = vmatpush3.bf16.msra.mxu1 %v2666_v5 }
 0x160   : > { %2509 = vmatprep.subr.bf16.mxu1 %v2748_v31 }
 0x162   : > { %2502 = vmatpush3.bf16.msra.mxu0 %v2663_v39 }
 0x163   : > { %2515 = vmatprep.subr.bf16.mxu0 %v2748_v31  ;;  %2510 = vmatpush3.bf16.msra.mxu1 %v2667_v6 }
 0x164   : > { %2523 = vmatprep.subr.bf16.mxu1 %v2748_v31 }
 0x165   : > { %2504 = vmatmul.mubr.msk.bf16.vlgmr.msra.gmra.mrb[4].mxu0 %vm616_vm2, %v2914_v37 }
 0x166   : > { %2516 = vmatpush3.bf16.msra.mxu0 %v2664_v40  ;;  %2519 = vmatprep.mubr.msk.bf16.mxu0 %vm2749_vm1, %v2748_v31 }
 0x167   : > { %2517 = vmatprep.subr.bf16.mxu0 %v2748_v31  ;;  %2512 = vmatmul.mubr.msk.bf16.vlgmr.msra.gmra.mrb[4].mxu1 %vm616_vm2, %v2914_v37 }
 0x168   : > { %2527 = vmatprep.mubr.msk.bf16.mxu1 %vm2749_vm1, %v2748_v31  ;;  %2524 = vmatpush3.bf16.msra.mxu1 %v2668_v29 }
 0x169   : > { %2525 = vmatprep.subr.bf16.mxu1 %v2748_v31 }
 0x16a   : > { %2518 = vmatpush3.bf16.msra.mxu0 %v2665_v41 }
 0x16b   : > { %2531 = vmatprep.subr.mxu0 %v2748_v31 }
 0x16c   : > { %2526 = vmatpush3.bf16.msra.mxu1 %v2669_v30 }
 0x16d   : > { %2520 = vmatmul.mubr.msk.bf16.vlgmr.msra.gmra.mrb[8].mxu0 %vm616_vm2, %v2914_v37  ;;  %2546 = vmatprep.subr.mxu1 %v2748_v31 }
 0x16e   : > { %2533 = vmatprep.mubr.msk.f32.mxu0 %vm2749_vm1, %v2748_v31 }
 0x16f   : > { %2528 = vmatmul.mubr.msk.bf16.vlgmr.msra.gmra.mrb[8].mxu1 %vm616_vm2, %v2914_v37 }
 0x170   : > { %2548 = vmatprep.mubr.msk.f32.mxu1 %vm2749_vm1, %v2748_v31 }
 0x22f   : > { %v720_v44 = vpop.f32.mrb[0].mxu1 }
 0x230   : > { %v721_v45 = vadd.f32 %v2347_v42, %v720_v44  ;;  %v2497_v46 = vpop.f32.mrb[1].mxu1  ;;  %v654_v47 = vpop.f32.mrb[0].mxu0 }
 0x231   : > { %v723_v48 = vpop.f32.mrb[2].mxu1  ;;  %v655_v49 = vadd.f32 %v2338_v43, %v654_v47  ;;  %v2489_v50 = vpop.f32.mrb[1].mxu0 }
 0x232   : > { %v2944_v51 = vadd.f32 %v2347_v42, %v723_v48  ;;  %v2498_v52 = vpop.f32.mrb[3].mxu1  ;;  %2532 = vmatpush3.xpose.msk.msra.mxu0 %vm992_vm3, %v721_v45  ;;  %v657_v53 = vpop.f32.mrb[2].mxu0  ;;  %v2383_v48 = vld [vmem:[%s2855_s23 + $0x5] ss:$0 sm:$0xff] }
 0x233   : > { %v2947_v54 = vadd.f32 %v2338_v43, %v657_v53  ;;  %v2490_v55 = vpop.f32.mrb[3].mxu0  ;;  %2536 = vmatprep.subr.mxu0 %v2748_v31 }
 0x234   : > { %v2671_v55 = vld [vmem:[%s2844_s16 + $0x8] sm:$0xff]  }
 0x235   : > { %2534 = vmatmul.mubr.msk.f32.vlgmr.msra.gmra.mrb[12].mxu0 %vm992_vm3, %v655_v49 }
 0x236   : > { %2538 = vmatprep.mubr.msk.f32.mxu0 %vm2749_vm1, %v2748_v31 }
 0x238   : > { %v786_v57 = vpop.f32.mrb[4].mxu0 }
 0x239   : > { %v787_v58 = vadd.f32 %v2356_v56, %v786_v57  ;;  %v2505_v59 = vpop.f32.mrb[5].mxu0 }
 0x23a   : > { %v789_v60 = vpop.f32.mrb[6].mxu0  ;;  %v852_v18 = vpop.f32.mrb[4].mxu1 }
 0x23b   : > { %v2954_v61 = vadd.f32 %v2356_v56, %v789_v60  ;;  %v2506_v62 = vpop.f32.mrb[7].mxu0  ;;  %2537 = vmatpush3.msra.mxu0 %v787_v58  ;;  %v2513_v19 = vpop.f32.mrb[5].mxu1  ;;  %v853_v28 = vadd.f32 %v2365_v20, %v852_v18  ;;  %v3001_v58 = vld [vmem:[%s2844_s16] sm:$0xff]   ;;  %v1845_v18 = vlaneseq }
 0x23c   : > { %2541 = vmatprep.subr.mxu0 %v2748_v31  ;;  %v855_v21 = vpop.f32.mrb[6].mxu1 }
 0x23d   : > { %v2514_v22 = vpop.f32.mrb[7].mxu1  ;;  %v2974_v23 = vadd.f32 %v2365_v20, %v855_v21  ;;  %v3036_v19 = vshrl.u32 %v1845_v18, 7 }
 0x240   : > { %v918_v0 = vpop.f32.mrb[8].mxu0 }
 0x241   : > { %v2521_v1 = vpop.f32.mrb[9].mxu0  ;;  %v919_v27 = vadd.f32 %v2374_v63, %v918_v0 }
 0x242   : > { %v921_v2 = vpop.f32.mrb[10].mxu0  ;;  %v984_v46 = vpop.f32.mrb[8].mxu1 }
 0x243   : > { %v2958_v3 = vadd.f32 %v2374_v63, %v921_v2  ;;  %v2522_v4 = vpop.f32.mrb[11].mxu0  ;;  %v2529_v47 = vpop.f32.mrb[9].mxu1  ;;  %v985_v50 = vadd.f32 %v2383_v48, %v984_v46 }
 0x244   : > { %v987_v49 = vpop.f32.mrb[10].mxu1 }
 0x245   : > { %v2530_v52 = vpop.f32.mrb[11].mxu1  ;;  %v2995_v53 = vadd.f32 %v2383_v48, %v987_v49  ;;  %2547 = vmatpush3.msra.mxu1 %v985_v50 }
 0x246   : > { %2557 = vmatprep.subr.bf16.mxu1 %v2748_v31 }
 0x308   : > { %v1065_v7 = vpop.f32.mrb[12].mxu0 }
 0x309   : > { %v1069_v9 = vmul.f32 0.25, %v1065_v7  ;;  %v2535_v10 = vpop.f32.mrb[13].mxu0 }
 0x30b   : > { %v1074_v11 = vadd.f32 %v2389_v8, %v1069_v9 }
 0x30d   : > { %v1076_v12 = vsel %vm1075_vm4, %v1074_v11, -inf }
 0x30e   : > { %1077 = vmax.xlane.f32.xlu0 %v1076_v12 }
 0x39b   : > { %v1078_v13 = vpop.xlane.xlu0 %1077 }
 0x39c   : > { %v1079_v14 = vsub.f32 %v1074_v11, %v1078_v13 }
 0x39e   : > { %v1080_v15 = vmul.f32 1.442695, %v1079_v14 }
 0x3a0   : > { %2678 = vpow2.f32 %v1080_v15 }
 0x3aa   : > { %v2679_v16 = vpop.eup %2678 }
 0x3ab   : > { %v1082_v17 = vsel %vm1075_vm4, %v2679_v16, 0.0 }
 0x3ac   : > { %1083 = vadd.xlane.f32.xlu0 %v1082_v17 }
 0x439   : > { %v1084_v24 = vpop.xlane.xlu0 %1083 }
 0x43a   : > { %2680 = vrcp.f32 %v1084_v24 }
 0x444   : > { %v2681_v25 = vpop.eup %2680 }
 0x445   : > { %v1086_v26 = vmul.f32 %v2681_v25, %v2679_v16  ;;  %v3040_v25 = vld [vmem:[%s2860_s13] sm:$0xff] }
 0x447   : > { %2539 = vmatmul.mubr.msk.f32.vlgmr.msra.gmra.mrb[14].mxu0 %vm1075_vm4, %v1086_v26 }
 0x448   : > { %2542 = vmatpush3.xpose.msk.msra.mxu0 %vm992_vm3, %v919_v27  ;;  %2543 = vmatprep.mubr.msk.f32.mxu0 %vm2749_vm1, %v2748_v31 }
 0x449   : > { %2551 = vmatprep.subr.bf16.mxu0 %v2748_v31 }
 0x44b   : > { %2544 = vmatmul.mubr.msk.f32.vlgmr.msra.gmra.mrb[16].mxu0 %vm992_vm3, %v853_v28 }
 0x44c   : > { %2553 = vmatprep.mubr.msk.bf16.mxu0 %vm2749_vm1, %v2748_v31  ;;  %2552 = vmatpush3.bf16.msra.mxu0 %v2671_v55 }
 0x44d   : > { %2563 = vmatprep.subr.mxu0 %v2748_v31 }
 0x51a   : > { %v1156_v32 = vpop.f32.mrb[14].mxu0 }
 0x51b   : > { %v2540_v33 = vpop.f32.mrb[15].mxu0  ;;  %v1160_v60 = vpack.c.bf16 %v1156_v32, %v1156_v32 }
 0x51e   : > { %v1235_v34 = vpop.f32.mrb[16].mxu0 }
 0x51f   : > { %v1239_v38 = vmul.f32 0.25, %v1235_v34  ;;  %v2545_v39 = vpop.f32.mrb[17].mxu0 }
 0x521   : > { %v1240_v40 = vadd.f32 %v2389_v8, %v1239_v38  ;;  %v2402_v8 = vld [vmem:[%s3146_s1 + $0x1] ss:$0 sm:$0xff] }
 0x523   : > { %v1241_v41 = vsel %vm1075_vm4, %v1240_v40, -inf }
 0x524   : > { %1242 = vmax.xlane.f32.xlu1 %v1241_v41 }
 0x5b1   : > { %v1243_v42 = vpop.xlane.xlu1 %1242 }
 0x5b2   : > { %v1244_v43 = vsub.f32 %v1240_v40, %v1243_v42 }
 0x5b4   : > { %v1245_v44 = vmul.f32 1.442695, %v1244_v43 }
 0x5b6   : > { %2682 = vpow2.f32 %v1245_v44 }
 0x5c0   : > { %v2683_v45 = vpop.eup %2682 }
 0x5c1   : > { %v1247_v37 = vsel %vm1075_vm4, %v2683_v45, 0.0 }
 0x5c2   : > { %1248 = vadd.xlane.f32.xlu1 %v1247_v37 }
 0x64f   : > { %v1249_v56 = vpop.xlane.xlu1 %1248 }
 0x650   : > { %2684 = vrcp.f32 %v1249_v56 }
 0x65a   : > { %v2685_v57 = vpop.eup %2684 }
 0x65b   : > { %v1251_v59 = vmul.f32 %v2685_v57, %v2683_v45 }
 0x65d   : > { %2549 = vmatmul.mubr.msk.f32.vlgmr.msra.gmra.mrb[12].mxu1 %vm1075_vm4, %v1251_v59 }
 0x65e   : > { %2558 = vmatpush3.bf16.msra.mxu1 %v3001_v58  ;;  %2559 = vmatprep.mubr.msk.bf16.mxu1 %vm2749_vm1, %v2748_v31 }
 0x65f   : > { %2568 = vmatprep.subr.mxu1 %v2748_v31 }
 0x661   : > { %2560 = vmatmul.mubr.msk.bf16.vlgmr.msra.gmra.mrb[16].mxu1 %vm992_vm3, %v1160_v60 }
 0x662   : > { %2569 = vmatpush3.msra.mxu1 %v2954_v61  ;;  %2570 = vmatprep.mubr.msk.f32.mxu1 %vm2749_vm1, %v2748_v31 }
 0x663   : > { %2578 = vmatprep.subr.mxu1 %v2748_v31 }
 0x730   : > { %v1321_v62 = vpop.f32.mrb[12].mxu1 }
 0x731   : > { %v1325_v63 = vpack.c.bf16 %v1321_v62, %v1321_v62  ;;  %v2550_v0 = vpop.f32.mrb[13].mxu1 }
 0x733   : > { %2554 = vmatmul.mubr.msk.bf16.vlgmr.msra.gmra.mrb[20].mxu0 %vm992_vm3, %v1325_v63 }
 0x734   : > { %2564 = vmatpush3.xpose.msk.msra.mxu0 %vm992_vm3, %v2944_v51  ;;  %v1421_v1 = vpop.f32.mrb[16].mxu1  ;;  %2565 = vmatprep.mubr.msk.f32.mxu0 %vm2749_vm1, %v2748_v31 }
 0x735   : > { %v2561_v2 = vpop.f32.mrb[17].mxu1  ;;  %2573 = vmatprep.subr.mxu0 %v2748_v31 }
 0x736   : > { %v1424_v61 = vpop.f32.mrb[18].mxu1 }
 0x737   : > { %v2562_v4 = vpop.f32.mrb[19].mxu1 }
 0x73b   : > { %2566 = vmatmul.mubr.msk.f32.vlgmr.msra.gmra.mrb[18].mxu0 %vm992_vm3, %v2947_v54 }
 0x73c   : > { %2574 = vmatpush3.xpose.msk.msra.mxu0 %vm992_vm3, %v2958_v3  ;;  %2575 = vmatprep.mubr.msk.f32.mxu0 %vm2749_vm1, %v2748_v31 }
 0x73d   : > { %2583 = vmatprep.subr.bf16.mxu0 %v2748_v31 }
 0x73f   : > { %2576 = vmatmul.mubr.msk.f32.vlgmr.msra.gmra.mrb[24].mxu0 %vm992_vm3, %v2974_v23  ;;  %v1847_v23 = vsub.s32 0, %v3036_v19 }
 0x740   : > { %2584 = vmatpush3.bf16.msra.mxu0 %v2671_v55  ;;  %2585 = vmatprep.mubr.msk.bf16.mxu0 %vm2749_vm1, %v2748_v31 }
 0x741   : > { %2595 = vmatprep.subr.bf16.mxu0 %v2748_v31  ;;  %v1848_v28 = vrot.slane %v3040_v25, %v1847_v23 }
 0x806   : > { %v1372_v51 = vpop.f32.mrb[20].mxu0 }
 0x807   : > { %v1422_v5 = vadd.f32 %v1421_v1, %v1372_v51  ;;  %v2555_v54 = vpop.f32.mrb[21].mxu0 }
 0x808   : > { %v1375_v6 = vpop.f32.mrb[22].mxu0 }
 0x809   : > { %v2556_v7 = vpop.f32.mrb[23].mxu0  ;;  %v1849_v29 = vadd.f32 %v1848_v28, %v1422_v5 }
 0x80b   : > { %v1851_v33 = vadd.f32 %v1849_v29, %v2906_v35 }
 0x80d   : > { %v1853_v38 = vsel %vm616_vm2, %v1851_v33, 0.0 }
 0x80e   : > { %v1500_v3 = vpop.f32.mrb[18].mxu0 }
 0x80f   : > { %v1504_v9 = vmul.f32 0.25, %v1500_v3  ;;  %v2567_v10 = vpop.f32.mrb[19].mxu0 }
 0x811   : > { %v1509_v11 = vadd.f32 %v2402_v8, %v1504_v9  ;;  %v2673_v9 = vld [vmem:[%s2865_s15 + $0x8] sm:$0xff]  }
 0x812   : > { %v1667_v12 = vpop.f32.mrb[24].mxu0 }
 0x813   : > { %v1671_v13 = vmul.f32 0.25, %v1667_v12  ;;  %v2577_v14 = vpop.f32.mrb[25].mxu0  ;;  %v1510_v15 = vsel %vm1075_vm4, %v1509_v11, -inf }
 0x814   : > { %1511 = vmax.xlane.f32.xlu0 %v1510_v15  ;;  %v1882_v15 = vsub.s32 1, %v3036_v19 }
 0x815   : > { %v1672_v16 = vadd.f32 %v2402_v8, %v1671_v13  ;;  %v2672_v8 = vld [vmem:[%s2865_s15] sm:$0xff]   ;;  %s3170_s15 = sld [smem:[#allocation9_spill]] (!%p2418_p5) }
 0x817   : > { %v1673_v17 = vsel %vm1075_vm4, %v1672_v16, -inf }
 0x818   : > { %1674 = vmax.xlane.f32.xlu1 %v1673_v17  ;;  %v1883_v17 = vrot.slane %v3040_v25, %v1882_v15 }
 0x8a1   : > { %v1512_v20 = vpop.xlane.xlu0 %1511 }
 0x8a2   : > { %v1513_v21 = vsub.f32 %v1509_v11, %v1512_v20  ;;  %v1888_v20 = vsub.s32 2, %v3036_v19 }
 0x8a4   : > { %v1514_v22 = vmul.f32 1.442695, %v1513_v21 }
 0x8a5   : > { %v1675_v24 = vpop.xlane.xlu1 %1674 }
 0x8a6   : > { %2686 = vpow2.f32 %v1514_v22  ;;  %v1676_v26 = vsub.f32 %v1672_v16, %v1675_v24  ;;  %v1889_v24 = vrot.slane %v3040_v25, %v1888_v20 }
 0x8a8   : > { %v1677_v27 = vmul.f32 1.442695, %v1676_v26 }
 0x8aa   : > { %2688 = vpow2.f32 %v1677_v27 }
 0x8b0   : > { %v2687_v30 = vpop.eup %2686 }
 0x8b1   : > { %v1516_v32 = vsel %vm1075_vm4, %v2687_v30, 0.0 }
 0x8b2   : > { %1517 = vadd.xlane.f32.xlu0 %v1516_v32  ;;  %v2675_v32 = vld [vmem:[%s2875_s30 + $0x8] sm:$0xff]  }
 0x8b4   : > { %v2689_v34 = vpop.eup %2688 }
 0x8b5   : > { %v1679_v39 = vsel %vm1075_vm4, %v2689_v34, 0.0 }
 0x8b6   : > { %1854 = vadd.xlane.f32.xlu0 %v1853_v38  ;;  %1680 = vadd.xlane.f32.xlu1 %v1679_v39  ;;  %v2409_v38 = vld [vmem:[%s529_s28] ss:$0 sm:$0xff] }
 0x93f   : > { %v1518_v40 = vpop.xlane.xlu0 %1517 }
 0x940   : > { %2690 = vrcp.f32 %v1518_v40 }
 0x943   : > { %v1855_v41 = vpop.xlane.xlu0 %1854  ;;  %v1681_v42 = vpop.xlane.xlu1 %1680 }
 0x944   : > { %v1860_v43 = vmul.f32 0.03125, %v1855_v41  ;;  %2692 = vrcp.f32 %v1681_v42 }
 0x946   : > { %v1862_v44 = vsub.f32 %v1851_v33, %v1860_v43  ;;  %v2676_v33 = vld [vmem:[%s2875_s30 + $0x10] sm:$0xff]  }
 0x948   : > { %v1864_v45 = vmul.f32 %v1862_v44, %v1862_v44 }
 0x94a   : > { %v2691_v37 = vpop.eup %2690  ;;  %v1866_v46 = vsel %vm616_vm2, %v1864_v45, 0.0 }
 0x94b   : > { %v1520_v35 = vmul.f32 %v2691_v37, %v2687_v30  ;;  %1867 = vadd.xlane.f32.xlu0 %v1866_v46  ;;  %v2674_v30 = vld [vmem:[%s2875_s30] sm:$0xff]  }
 0x94d   : > { %2571 = vmatmul.mubr.msk.f32.vlgmr.msra.gmra.mrb[14].mxu1 %vm1075_vm4, %v1520_v35 }
 0x94e   : > { %v2693_v47 = vpop.eup %2692  ;;  %2579 = vmatpush3.msra.mxu1 %v2995_v53  ;;  %2580 = vmatprep.mubr.msk.f32.mxu1 %vm2749_vm1, %v2748_v31 }
 0x94f   : > { %v1683_v48 = vmul.f32 %v2693_v47, %v2689_v34  ;;  %2589 = vmatprep.subr.bf16.mxu1 %v2748_v31  ;;  %v2677_v34 = vld [vmem:[%s2875_s30 + $0x18] sm:$0xff]  }
 0x951   : > { %2581 = vmatmul.mubr.msk.f32.vlgmr.msra.gmra.mrb[20].mxu1 %vm1075_vm4, %v1683_v48 }
 0x952   : > { %2590 = vmatpush3.bf16.msra.mxu1 %v3001_v58  ;;  %2591 = vmatprep.mubr.msk.bf16.mxu1 %vm2749_vm1, %v2748_v31 }
 0x953   : > { %2603 = vmatprep.subr.bf16.mxu1 %v2748_v31 }
 0x9d8   : > { %v1868_v10 = vpop.xlane.xlu0 %1867 }
 0x9d9   : > { %v1872_v11 = vmul.f32 0.03125, %v1868_v10 }
 0x9db   : > { %v1874_v12 = vadd.f32 1e-12, %v1872_v11 }
 0x9dd   : > { %2694 = vrsqrt.f32 %v1874_v12 }
 0x9e7   : > { %v2695_v16 = vpop.eup %2694 }
 0x9e8   : > { %v1878_v18 = vmul.f32 %v2695_v16, %v1862_v44 }
 0x9ea   : > { %v1884_v22 = vmul.f32 %v1883_v17, %v1878_v18 }
 0x9ec   : > { %v1890_v27 = vadd.f32 %v1889_v24, %v1884_v22 }
 0xa20   : > { %v1590_v49 = vpop.f32.mrb[14].mxu1 }
 0xa21   : > { %v1594_v50 = vpack.c.bf16 %v1590_v49, %v1590_v49  ;;  %v2572_v52 = vpop.f32.mrb[15].mxu1 }
 0xa23   : > { %2592 = vmatmul.mubr.msk.bf16.vlgmr.msra.gmra.mrb[24].mxu1 %vm992_vm3, %v1594_v50 }
 0xa24   : > { %v1753_v53 = vpop.f32.mrb[20].mxu1  ;;  %2611 = vmatprep.mubr.msk.bf16.mxu1 %vm2749_vm1, %v2748_v31  ;;  %2604 = vmatpush3.bf16.msra.mxu1 %v2674_v30 }
 0xa25   : > { %v1757_v55 = vpack.c.bf16 %v1753_v53, %v1753_v53  ;;  %v2582_v56 = vpop.f32.mrb[21].mxu1  ;;  %2605 = vmatprep.subr.bf16.mxu1 %v2748_v31 }
 0xa27   : > { %2586 = vmatmul.mubr.msk.bf16.vlgmr.msra.gmra.mrb[28].mxu0 %vm992_vm3, %v1757_v55 }
 0xa28   : > { %2599 = vmatprep.mubr.msk.bf16.mxu0 %vm2749_vm1, %v2748_v31  ;;  %2596 = vmatpush3.bf16.msra.mxu0 %v2672_v8 }
 0xa29   : > { %2597 = vmatprep.subr.bf16.mxu0 %v2748_v31  ;;  %2606 = vmatpush3.bf16.msra.mxu1 %v2675_v32 }
 0xa2a   : > { %2607 = vmatprep.subr.bf16.mxu1 %v2748_v31 }
 0xa2c   : > { %2598 = vmatpush3.bf16.msra.mxu0 %v2673_v9 }
 0xa2d   : > { %2608 = vmatpush3.bf16.msra.mxu1 %v2676_v33 }
 0xa2e   : > { %2609 = vmatprep.subr.bf16.mxu1 %v2748_v31 }
 0xa31   : > { %2610 = vmatpush3.bf16.msra.mxu1 %v2677_v34 }
 0xaf6   : > { %v1838_v57 = vpop.f32.mrb[24].mxu1 }
 0xaf7   : > { %v2593_v58 = vpop.f32.mrb[25].mxu1 }
 0xaf8   : > { %v1841_v59 = vpop.f32.mrb[26].mxu1 }
 0xaf9   : > { %v2594_v60 = vpop.f32.mrb[27].mxu1 }
 0xafa   : > { %v1795_v62 = vpop.f32.mrb[28].mxu0 }
 0xafb   : > { %v1839_v63 = vadd.f32 %v1838_v57, %v1795_v62  ;;  %v2587_v0 = vpop.f32.mrb[29].mxu0 }
 0xafc   : > { %v1798_v1 = vpop.f32.mrb[30].mxu0  ;;  %v1989_v0 = vsub.s32 3, %v3036_v19 }
 0xafd   : > { %v1850_v2 = vadd.f32 %v1848_v28, %v1839_v63  ;;  %v2588_v61 = vpop.f32.mrb[31].mxu0 }
 0xafe   : > { %v1990_v1 = vrot.slane %v3040_v25, %v1989_v0 }
 0xaff   : > { %v1852_v4 = vadd.f32 %v1850_v2, %v2908_v36 }
 0xb01   : > { %v1856_v51 = vsel %vm616_vm2, %v1852_v4, 0.0 }
 0xb02   : > { %1857 = vadd.xlane.f32.xlu1 %v1856_v51 }
 0xb8f   : > { %v1858_v5 = vpop.xlane.xlu1 %1857 }
 0xb90   : > { %v1861_v54 = vmul.f32 0.03125, %v1858_v5 }
 0xb92   : > { %v1863_v6 = vsub.f32 %v1852_v4, %v1861_v54 }
 0xb94   : > { %v1865_v7 = vmul.f32 %v1863_v6, %v1863_v6 }
 0xb96   : > { %v1869_v3 = vsel %vm616_vm2, %v1865_v7, 0.0 }
 0xb97   : > { %1870 = vadd.xlane.f32.xlu1 %v1869_v3 }
 0xc24   : > { %v1871_v36 = vpop.xlane.xlu1 %1870 }
 0xc25   : > { %v1873_v13 = vmul.f32 0.03125, %v1871_v36 }
 0xc27   : > { %v1875_v14 = vadd.f32 1e-12, %v1873_v13 }
 0xc29   : > { %2696 = vrsqrt.f32 %v1875_v14 }
 0xc33   : > { %v2697_v21 = vpop.eup %2696 }
 0xc34   : > { %v1879_v23 = vmul.f32 %v2697_v21, %v1863_v6 }
 0xc36   : > { %v1885_v26 = vmul.f32 %v1883_v17, %v1879_v23 }
 0xc38   : > { %v1891_v28 = vadd.f32 %v1889_v24, %v1885_v26  ;;  %v2090_v26 = vsub.s32 4, %v3036_v19 }
 0xc3a   : > { %v1892_v29 = vpack.c.bf16 %v1891_v28, %v1890_v27 }
 0xc3c   : > { %2600 = vmatmul.mubr.msk.bf16.vlgmr.msra.gmra.mrb[32].mxu0 %vm616_vm2, %v1892_v29 }
 0xd0f   : > { %v1953_v39 = vpop.f32.mrb[32].mxu0 }
 0xd10   : > { %v1954_v40 = vadd.f32 %v2409_v38, %v1953_v39  ;;  %v2601_v41 = vpop.f32.mrb[33].mxu0 }
 0xd11   : > { %v1956_v42 = vpop.f32.mrb[34].mxu0 }
 0xd12   : > { %v1962_v43 = vmul.f32 0.044715, %v1954_v40  ;;  %v1957_v44 = vadd.f32 %v2409_v38, %v1956_v42  ;;  %v2602_v45 = vpop.f32.mrb[35].mxu0  ;;  %v1960_v57 = vmul.f32 0.5, %v1954_v40  ;;  %v2113_v42 = vld [vmem:[%s3170_s15 + $0x10] sm:$0xff] (!%p2418_p5) }
 0xd13   : > { %v2114_v45 = vld [vmem:[%s3170_s15 + $0x18] sm:$0xff] (!%p2418_p5) }
 0xd14   : > { %v1964_v37 = vmul.f32 %v1962_v43, %v1954_v40  ;;  %v1963_v46 = vmul.f32 0.044715, %v1957_v44  ;;  %v1961_v58 = vmul.f32 0.5, %v1957_v44  ;;  %v2750_v43 = vmov (!%p2418_p5), 0.0|0.0  }
 0xd15   : > { %2626 = vmatprep.subr.bf16.mxu0 (!%p2418_p5), %v2750_v43 }
 0xd16   : > { %v1966_v35 = vmul.f32 %v1964_v37, %v1954_v40  ;;  %v1965_v47 = vmul.f32 %v1963_v46, %v1957_v44  ;;  %v2752_v37 = vmov (!%p2418_p5), 0.0   ;;  %v2630_v46 = vpack.c.bf16 (!%p2418_p5), %v2114_v45, %v2113_v42 }
 0xd17   : > { %2623 = vmatprep.mubr.msk.f32.mxu0 (!%p2418_p5), %vm2751_vm6, %v2752_v37 }
 0xd18   : > { %v1968_v48 = vadd.f32 %v1966_v35, %v1954_v40  ;;  %v1967_v49 = vmul.f32 %v1965_v47, %v1957_v44 }
 0xd1a   : > { %v1970_v31 = vmul.f32 0.7978846, %v1968_v48  ;;  %v1969_v50 = vadd.f32 %v1967_v49, %v1957_v44  ;;  %v2419_v48 = vld [vmem:[%s3171_s4] ss:$0 sm:$0xff] (!%p2418_p5) }
 0xd1c   : > { %2698 = vtanh.f32 %v1970_v31  ;;  %v1971_v52 = vmul.f32 0.7978846, %v1969_v50 }
 0xd1e   : > { %2700 = vtanh.f32 %v1971_v52 }
 0xd26   : > { %v2699_v53 = vpop.eup %2698 }
 0xd27   : > { %v1974_v55 = vadd.f32 1.0, %v2699_v53 }
 0xd28   : > { %v2701_v56 = vpop.eup %2700 }
 0xd29   : > { %v1975_v59 = vadd.f32 1.0, %v2701_v56  ;;  %v1976_v60 = vmul.f32 %v1974_v55, %v1960_v57 }
 0xd2b   : > { %v1977_v62 = vmul.f32 %v1975_v59, %v1961_v58 }
 0xd2d   : > { %v1978_v63 = vpack.c.bf16 %v1977_v62, %v1976_v60 }
 0xd2f   : > { %2612 = vmatmul.mubr.msk.bf16.vlgmr.msra.gmra.mrb[28].mxu1 %vm2015_vm5, %v1978_v63 }
 0xe02   : > { %v2053_v2 = vpop.f32.mrb[28].mxu1 }
 0xe03   : > { %v2054_v61 = vadd.f32 %v2053_v2, %v1990_v1  ;;  %v2613_v4 = vpop.f32.mrb[29].mxu1 }
 0xe04   : > { %v2056_v51 = vpop.f32.mrb[30].mxu1 }
 0xe05   : > { %v2057_v5 = vadd.f32 %v2056_v51, %v1990_v1  ;;  %v2614_v54 = vpop.f32.mrb[31].mxu1  ;;  %v2060_v6 = vadd.f32 %v2054_v61, %v1890_v27  ;;  %v2096_v27 = vsub.s32 5, %v3036_v19  ;;  %v2111_v19 = vld [vmem:[%s3170_s15] sm:$0xff] (!%p2418_p5) }
 0xe07   : > { %v2062_v7 = vsel %vm616_vm2, %v2060_v6, 0.0  ;;  %v2061_v3 = vadd.f32 %v2057_v5, %v1891_v28  ;;  %v2091_v28 = vrot.slane %v3040_v25, %v2090_v26  ;;  %v2097_v30 = vrot.slane %v3040_v25, %v2096_v27  ;;  %v2112_v25 = vld [vmem:[%s3170_s15 + $0x8] sm:$0xff] (!%p2418_p5) }
 0xe08   : > { %2063 = vadd.xlane.f32.xlu0 %v2062_v7  ;;  %v2627_v44 = vpack.c.bf16 (!%p2418_p5), %v2112_v25, %v2111_v19 }
 0xe09   : > { %v2065_v8 = vsel %vm616_vm2, %v2061_v3, 0.0 }
 0xe0a   : > { %2066 = vadd.xlane.f32.xlu1 %v2065_v8  ;;  %2628 = vmatpush3.bf16.msra.mxu0 (!%p2418_p5), %v2627_v44 }
 0xe0b   : > { %2629 = vmatprep.subr.bf16.mxu0 (!%p2418_p5), %v2750_v43 }
 0xe0e   : > { %2631 = vmatpush3.bf16.msra.mxu0 (!%p2418_p5), %v2630_v46 }
 0xe95   : > { %v2064_v9 = vpop.xlane.xlu0 %2063 }
 0xe96   : > { %v2068_v10 = vmul.f32 0.03125, %v2064_v9 }
 0xe97   : > { %v2067_v11 = vpop.xlane.xlu1 %2066 }
 0xe98   : > { %v2070_v12 = vsub.f32 %v2060_v6, %v2068_v10  ;;  %v2069_v36 = vmul.f32 0.03125, %v2067_v11 }
 0xe9a   : > { %v2071_v13 = vsub.f32 %v2061_v3, %v2069_v36  ;;  %v2072_v14 = vmul.f32 %v2070_v12, %v2070_v12 }
 0xe9c   : > { %v2074_v15 = vsel %vm616_vm2, %v2072_v14, 0.0  ;;  %v2073_v16 = vmul.f32 %v2071_v13, %v2071_v13 }
 0xe9d   : > { %2075 = vadd.xlane.f32.xlu0 %v2074_v15 }
 0xe9e   : > { %v2077_v17 = vsel %vm616_vm2, %v2073_v16, 0.0 }
 0xe9f   : > { %2078 = vadd.xlane.f32.xlu1 %v2077_v17 }
 0xf2a   : > { %v2076_v18 = vpop.xlane.xlu0 %2075 }
 0xf2b   : > { %v2080_v20 = vmul.f32 0.03125, %v2076_v18 }
 0xf2c   : > { %v2079_v21 = vpop.xlane.xlu1 %2078 }
 0xf2d   : > { %v2082_v22 = vadd.f32 1e-12, %v2080_v20  ;;  %v2081_v23 = vmul.f32 0.03125, %v2079_v21 }
 0xf2f   : > { %2702 = vrsqrt.f32 %v2082_v22  ;;  %v2083_v24 = vadd.f32 1e-12, %v2081_v23 }
 0xf31   : > { %2704 = vrsqrt.f32 %v2083_v24 }
 0xf39   : > { %v2703_v29 = vpop.eup %2702 }
 0xf3a   : > { %v2086_v32 = vmul.f32 %v2703_v29, %v2070_v12 }
 0xf3b   : > { %v2705_v33 = vpop.eup %2704 }
 0xf3c   : > { %v2092_v34 = vmul.f32 %v2091_v28, %v2086_v32  ;;  %v2087_v38 = vmul.f32 %v2705_v33, %v2071_v13  ;;  %2105 = sbr.rel (%p2418_p5) target bundleno = 4438 (0x1156), region = 80 }
 0xf3e   : > { %v2098_v39 = vadd.f32 %v2097_v30, %v2092_v34  ;;  %v2093_v40 = vmul.f32 %v2091_v28, %v2087_v38 }
 0xf40   : > { %2100 = vst.msk [vmem:[#allocation2] sm:$0xff] %vm616_vm2, %v2098_v39  ;;  %v2099_v41 = vadd.f32 %v2097_v30, %v2093_v40 }
 0xf42   : > { %2101 = vst.msk [vmem:[#allocation2 + $0x8] sm:$0xff] %vm616_vm2, %v2099_v41  ;;  %v2107_v35 = vrot.slane (!%p2418_p5), %v2099_v41, 7 }
 0xf44   : > { %v2110_v47 = vsel %vm2109_vm7, %v2098_v39, %v2107_v35 }
 0xf45   : > { %2624 = vmatmul.mubr.msk.f32.vlgmr.msra.gmra.mrb[0].mxu0 %vm616_vm2, %v2110_v47 }
0x1018   : > { %v2191_v49 = vpop.f32.mrb[0].mxu0 }
0x1019   : > { %v2192_v31 = vadd.f32 %v2419_v48, %v2191_v49  ;;  %v2625_v50 = vpop.f32.mrb[1].mxu0 }
0x101b   : > { %v2196_v52 = vsel %vm2195_vm8, %v2192_v31, -inf }
0x101c   : > { %2197 = vmax.xlane.f32.xlu0 %v2196_v52 }
0x10a9   : > { %v2198_v53 = vpop.xlane.xlu0 %2197 }
0x10aa   : > { %v2199_v55 = vsub.f32 %v2192_v31, %v2198_v53 }
0x10ac   : > { %v2200_v56 = vmul.f32 1.442695, %v2199_v55 }
0x10ae   : > { %2706 = vpow2.f32 %v2200_v56 }
0x10b8   : > { %v2707_v57 = vpop.eup %2706 }
0x10b9   : > { %v2202_v58 = vsel %vm2195_vm8, %v2707_v57, 0.0 }
0x10ba   : > { %2203 = vadd.xlane.f32.xlu0 %v2202_v58 }
0x1147   : > { %v2204_v59 = vpop.xlane.xlu0 %2203 }
0x1148   : > { %2708 = vrcp.f32 %v2204_v59 }
0x1152   : > { %v2709_v60 = vpop.eup %2708 }
0x1153   : > { %v2206_v62 = vmul.f32 %v2709_v60, %v2707_v57 }
0x1155   : > { %2207 = vst.msk [vmem:[#allocation3] sm:$0x3] %vm2195_vm8, %v2206_v62 }
0x1156 PF: > { %p2638_p6 = scmp.eq.s32.totalorder %s2830_s26, 1  ;;  %s2753_s6 = smov [#allocation3]  }
0x1157   : > { %s2215_s11 = sshll.u32 %s2753_s6, 4  ;;  %s2216_s11 = int_to_ptr.vmem [resolvable:$true] %s2215_s11 }
0x1158   : > { %s2710_s21 = scalar_lea.vmem %s2216_s11, 32  ;;  %p2717_p10 = scmp.lt.s32.totalorder %s2216_s11, %s2216_s11 }
0x1159   : > { %p2711_p7 = scmp.ne.s32.totalorder %s2216_s11, %s2710_s21  ;;  %p2718_p11 = scmp.lt.s32.totalorder %s2710_s21, %s2710_s21 }
0x115b   : > { %p2712_p8 = pnand %p2711_p7, %p2638_p6  ;;  %p2719_p12 = por %p2718_p11, %p2717_p10 }
0x115d   : > { %p2713_p9 = pneg %p2712_p8 }
0x115f   : > { %p2720_p13 = pnand %p2719_p12, %p2713_p9 }
0x1161   : > { %2723 = shalt.err (!%p2720_p13)
}
0x1162   : > { %s3172_s16 = sld [smem:[#allocation11_spill]] }
0x1168   : > { %s2724_s19 = scalar_lea.hbm %s3172_s16, 32 }
0x1169   : > { %p2725_p0 = scmp.ne.s32.totalorder %s3172_s16, %s2724_s19  ;;  %p2730_p3 = scmp.lt.u32.totalorder %s2724_s19, %s3172_s16 }
0x116b   : > { %p2726_p1 = pnand %p2725_p0, %p2638_p6 }
0x116d   : > { %p2727_p2 = pneg %p2726_p1 }
0x116f   : > { %p2732_p4 = pnand %p2730_p3, %p2727_p2 }
0x1171   : > { %2735 = shalt.err (!%p2732_p4)
}
0x1172   : > { %2635 = dma.vmem_to_hbm [thread:$0]  (%p2638_p6), %s2216_s11, 32, %s3172_s16, [#allocation4]  }
0x1173   : > { %2741 = dma.done.wait (%p2638_p6), [#allocation4], 32  }
0x1174   : > { %2743 = vsyncadd (%p2638_p6), [#allocation4], 4294967264 }
0x1175 PF: > { %s3173_s18 = sld [smem:[#allocation6_spill]] }
0x117b   : > { %s24_s25 = sadd.s32 1, %s3173_s18  }
0x117c   : > { %p21_p5 = scmp.ge.s32.totalorder %s24_s25, 4  }
0x117e   :  { %23 = sbr.rel (!%p21_p5) target bundleno = 7 (0x7), region = 136 }
0x1185   :  { %2228 = vsyncpa [#allocation4], 1 }
0x1186   :  { %2230 = vsyncpa [#allocation4 + $0x1], 1 }

</bundles_post_ra>
